<compile_context>
chip_gen: v7x
topology: tpu7x:2x2x1
jax: 0.10.0
libtpu: 0.0.40
codegen_flags: <defaults>
</compile_context>

<pallas_src>
import functools

import jax
import jax.numpy as jnp
from jax import lax
from jax.experimental import pallas as pl
from jax.experimental.pallas import tpu as pltpu


# ----------------------------- fused kernel --------------------------------

def _cross_attn_kernel(*refs, heads, project, out_dim):
    """One (batch, q_tile) grid step of multi-head cross attention."""
    if project:
        (x_q_ref, x_kv_ref, wq_ref, wk_ref, wv_ref, wout_ref, bout_ref,
         o_ref, k_scr, v_scr) = refs
    else:
        (x_q_ref, x_kv_ref, wq_ref, wk_ref, wv_ref,
         o_ref, k_scr, v_scr) = refs
        wout_ref = bout_ref = None

    qi = pl.program_id(1)

    # --- K/V projection: once per batch element, persisted across q tiles ---
    @pl.when(qi == 0)
    def _():
        x_kv = x_kv_ref[...].astype(jnp.bfloat16)                  # (n_kv, dim)
        for h in range(heads):                                     # static unroll
            k_scr[h] = jnp.dot(x_kv, wk_ref[h],
                               preferred_element_type=jnp.float32
                               ).astype(k_scr.dtype)               # (n_kv, dh)
            v_scr[h] = jnp.dot(x_kv, wv_ref[h],
                               preferred_element_type=jnp.float32
                               ).astype(v_scr.dtype)

    x_q = x_q_ref[...].astype(jnp.bfloat16)                        # (tq, dim)
    tq = x_q.shape[0]
    acc = jnp.zeros((tq, out_dim), jnp.float32)                    # f32 accumulator

    for h in range(heads):                                         # static unroll
        # scale (dim_head**-0.5) is folded into the packed W_q host-side.
        qh = jnp.dot(x_q, wq_ref[h],
                     preferred_element_type=jnp.float32)           # (tq, dh) f32
        kh = k_scr[h]                                              # (n_kv, dh) bf16
        vh = v_scr[h]                                              # (n_kv, dh) bf16

        # q . k^T contracting the last axis of both operands (no transpose).
        dots = lax.dot_general(qh.astype(jnp.bfloat16), kh,
                               (((1,), (1,)), ((), ())),
                               preferred_element_type=jnp.float32)  # (tq, n_kv)

        # Softmax entirely in f32.
        m = jnp.max(dots, axis=-1, keepdims=True)
        e = jnp.exp(dots - m)
        denom = jnp.sum(e, axis=-1, keepdims=True)
        attn = e * pl.reciprocal(denom)                            # exact recip

        oh = jnp.dot(attn.astype(jnp.bfloat16), vh,
                     preferred_element_type=jnp.float32)           # (tq, dh)

        if project:
            # Fused per-head output projection — no (h d) concat, no wide copy.
            acc = acc + jnp.dot(oh.astype(jnp.bfloat16), wout_ref[h],
                                preferred_element_type=jnp.float32)
        else:
            acc = acc + oh   # project_out=False implies heads == 1

    if project:
        acc = acc + bout_ref[...]                                  # (1, dim) bias
    o_ref[...] = acc.astype(o_ref.dtype)


# --------------------------- CrossAttention glue ---------------------------

def init_cross_attention_params(key, dim, heads, dim_head):
    inner_dim = dim_head * heads
    project_out = not (heads == 1 and dim_head == dim)
    k1, k2, k3, k4 = jax.random.split(key, 4)
    params = {
        "to_q_w": 0.1 * jax.random.normal(k1, (dim, inner_dim), jnp.float32),
        "to_kv_w": 0.1 * jax.random.normal(k2, (dim, 2 * inner_dim), jnp.float32),
    }
    if project_out:
        params["to_out_w"] = 0.1 * jax.random.normal(k3, (inner_dim, dim), jnp.float32)
        params["to_out_b"] = 0.1 * jax.random.normal(k4, (dim,), jnp.float32)
    return params, project_out


def _pick_tile_q(n_q, max_tile=512):
    """Largest q tile <= max_tile that keeps blocks (8,128)-legal."""
    if n_q <= max_tile:
        return n_q
    for t in range(max_tile - max_tile % 8, 7, -8):
        if n_q % t == 0:
            return t
    return n_q


def _const_spec(shape, pipeline_mode):
    """BlockSpec for a grid-invariant operand (whole array, constant index)."""
    zeros = (0,) * len(shape)
    if pipeline_mode is None:
        return pl.BlockSpec(shape, lambda i, qi: zeros)
    return pl.BlockSpec(shape, lambda i, qi: zeros, pipeline_mode=pipeline_mode)


def _forward(params, x_q, x_kv, heads, dim_head, project_out, tile_q,
             single_buffer_weights):
    b, n_q, dim = x_q.shape
    b2, n_kv, dim_kv = x_kv.shape
    assert dim == dim_kv and b == b2
    inner_dim = heads * dim_head
    scale = dim_head ** (-0.5)
    if not project_out:
        assert heads == 1 and dim_head == dim

    if tile_q is None:
        tile_q = _pick_tile_q(n_q)
    assert n_q % tile_q == 0 and (tile_q % 8 == 0 or tile_q == n_q)
    n_q_tiles = n_q // tile_q
    out_dim = dim if project_out else inner_dim

    # ---- host-side head-major packing (one-time, outside the kernel) ----
    # Scale folded into W_q; weights shipped as bf16 (halves DMA + VMEM).
    wq_p = (params["to_q_w"] * scale).reshape(dim, heads, dim_head)
    wq_p = wq_p.transpose(1, 0, 2).astype(jnp.bfloat16)             # (h, dim, dh)
    wkv = params["to_kv_w"]
    wk_p = wkv[:, :inner_dim].reshape(dim, heads, dim_head)
    wk_p = wk_p.transpose(1, 0, 2).astype(jnp.bfloat16)             # (h, dim, dh)
    wv_p = wkv[:, inner_dim:].reshape(dim, heads, dim_head)
    wv_p = wv_p.transpose(1, 0, 2).astype(jnp.bfloat16)             # (h, dim, dh)

    buf1 = pl.Buffered(buffer_count=1) if single_buffer_weights else None

    in_specs = [
        pl.BlockSpec((None, tile_q, dim), lambda i, qi: (i, qi, 0)),   # x_q tile
        pl.BlockSpec((None, n_kv, dim), lambda i, qi: (i, 0, 0)),      # x_kv slab
        _const_spec((heads, dim, dim_head), buf1),                     # W_q packed
        _const_spec((heads, dim, dim_head), buf1),                     # W_k packed
        _const_spec((heads, dim, dim_head), buf1),                     # W_v packed
    ]
    args = [x_q, x_kv, wq_p, wk_p, wv_p]
    if project_out:
        wout_p = params["to_out_w"].reshape(heads, dim_head, dim).astype(jnp.bfloat16)
        bias2d = params["to_out_b"].reshape(1, dim)
        in_specs += [
            _const_spec((heads, dim_head, dim), buf1),                 # W_out packed
            _const_spec((1, dim), buf1),                               # bias
        ]
        args += [wout_p, bias2d]

    # Head-major K/V projections persist in bf16 VMEM scratch across q tiles.
    scratch_shapes = [
        pltpu.VMEM((heads, n_kv, dim_head), jnp.bfloat16),             # K
        pltpu.VMEM((heads, n_kv, dim_head), jnp.bfloat16),             # V
    ]

    # Rough VMEM budget (double-buffered activation tiles, single-buffered
    # weights, K/V scratch, per-head f32 logits), 2x headroom, clamped so it
    # stays comfortably under v7x's 64 MiB physical VMEM.
    est = (2 * tile_q * dim * 4 + 2 * n_kv * dim * 4
           + 3 * heads * dim * dim_head * 2
           + (heads * dim_head * dim * 2 + dim * 4 if project_out else 0)
           + 2 * tile_q * out_dim * 4
           + 2 * heads * n_kv * max(dim_head, 128) * 2
           + 4 * tile_q * max(n_kv, 128) * 4)
    vmem_limit = int(min(48 << 20, max(16 << 20, 2 * est)))

    kern = functools.partial(_cross_attn_kernel, heads=heads,
                             project=project_out, out_dim=out_dim)

    return pl.pallas_call(
        kern,
        out_shape=jax.ShapeDtypeStruct((b, n_q, out_dim), x_q.dtype),
        grid=(b, n_q_tiles),
        in_specs=in_specs,
        out_specs=pl.BlockSpec((None, tile_q, out_dim), lambda i, qi: (i, qi, 0)),
        scratch_shapes=scratch_shapes,
        compiler_params=pltpu.CompilerParams(
            dimension_semantics=("parallel", "arbitrary"),
            vmem_limit_bytes=vmem_limit,
        ),
    )(*args)


def cross_attention_forward(params, x_q, x_kv, heads, dim_head, project_out,
                            tile_q=None):
    try:
        return _forward(params, x_q, x_kv, heads, dim_head, project_out,
                        tile_q, single_buffer_weights=True)
    except Exception:
        # Fallback for JAX builds where pl.Buffered(1) single-buffering of
        # grid-invariant operands is not supported by pallas_call lowering;
        # identical kernel, default double-buffered weights.
        return _forward(params, x_q, x_kv, heads, dim_head, project_out,
                        tile_q, single_buffer_weights=False)


# ------------------------------ reference ----------------------------------

def cross_attention_ref(params, x_q, x_kv, heads, dim_head, project_out):
    b, n_q, dim = x_q.shape
    n_kv = x_kv.shape[1]
    inner_dim = heads * dim_head
    scale = dim_head ** (-0.5)
    q = x_q @ params["to_q_w"]
    kv = x_kv @ params["to_kv_w"]
    k, v = kv[..., :inner_dim], kv[..., inner_dim:]
    q = q.reshape(b, n_q, heads, dim_head).transpose(0, 2, 1, 3)
    k = k.reshape(b, n_kv, heads, dim_head).transpose(0, 2, 1, 3)
    v = v.reshape(b, n_kv, heads, dim_head).transpose(0, 2, 1, 3)
    dots = jnp.einsum("bhid,bhjd->bhij", q, k) * scale
    attn = jax.nn.softmax(dots, axis=-1)
    out = jnp.einsum("bhij,bhjd->bhid", attn, v)
    out = out.transpose(0, 2, 1, 3).reshape(b, n_q, inner_dim)
    if project_out:
        out = out @ params["to_out_w"] + params["to_out_b"]
    return out


# --------------------------------- main -------------------------------------

if __name__ == "__main__":
    # Small shapes consistent with the module's forward:
    #   x_q: (batch, n_q, dim), x_kv: (batch, n_kv, dim)
    batch, n_q, n_kv, dim = 2, 16, 16, 32
    heads, dim_head = 4, 8  # inner_dim = 32 -> project_out = True

    key = jax.random.PRNGKey(0)
    kp, kq, kk = jax.random.split(key, 3)
    params, project_out = init_cross_attention_params(kp, dim, heads, dim_head)

    x_q = jax.random.normal(kq, (batch, n_q, dim), jnp.float32)
    x_kv = jax.random.normal(kk, (batch, n_kv, dim), jnp.float32)

    # tile_q=8 -> two q tiles per batch element, exercising both the n_q
    # tiling path and the persistent K/V-scratch reuse (@pl.when(q_tile == 0)).
    out = cross_attention_forward(params, x_q, x_kv, heads, dim_head,
                                  project_out, tile_q=8)
    out = jax.block_until_ready(out)

    ref = cross_attention_ref(params, x_q, x_kv, heads, dim_head, project_out)
    assert out.shape == (batch, n_q, dim)
    # bf16 MXU operands with f32 accumulation (softmax math stays f32):
    # expect ~1e-3-level deviation vs the all-f32 reference at these scales.
    err = float(jnp.max(jnp.abs(out - ref)))
    assert jnp.allclose(out, ref, atol=1e-2, rtol=1e-2), err

    print("KERNEL_OK")
</pallas_src>

<mosaic_0001>
module attributes {stable_mosaic.version = 11 : i64} {
  func.func @_cross_attn_kernel(%arg0: i32, %arg1: i32, %arg2: memref<1x8x32xf32, #tpu.memory_space<vmem>>, %arg3: memref<1x16x32xf32, #tpu.memory_space<vmem>>, %arg4: memref<4x32x8xbf16, #tpu.memory_space<vmem>>, %arg5: memref<4x32x8xbf16, #tpu.memory_space<vmem>>, %arg6: memref<4x32x8xbf16, #tpu.memory_space<vmem>>, %arg7: memref<4x8x32xbf16, #tpu.memory_space<vmem>>, %arg8: memref<1x32xf32, #tpu.memory_space<vmem>>, %arg9: memref<1x8x32xf32, #tpu.memory_space<vmem>>, %arg10: memref<4x16x8xbf16, #tpu.memory_space<vmem>>, %arg11: memref<4x16x8xbf16, #tpu.memory_space<vmem>>) attributes {dimension_semantics = [#tpu.dimension_semantics<parallel>, #tpu.dimension_semantics<arbitrary>], iteration_bounds = array<i64: 2, 2>, scalar_prefetch = 0 : i64, scratch_operands = 2 : i64, tpu.core_type = #tpu.core_type<tc>, window_params = [{transform_indices = @transform_0, window_bounds = array<i64: 1, 8, 32>}, {transform_indices = @transform_1, window_bounds = array<i64: 1, 16, 32>}, {pipeline_mode = #tpu.pipeline_mode<synchronous>, transform_indices = @transform_2, window_bounds = array<i64: 4, 32, 8>}, {pipeline_mode = #tpu.pipeline_mode<synchronous>, transform_indices = @transform_3, window_bounds = array<i64: 4, 32, 8>}, {pipeline_mode = #tpu.pipeline_mode<synchronous>, transform_indices = @transform_4, window_bounds = array<i64: 4, 32, 8>}, {pipeline_mode = #tpu.pipeline_mode<synchronous>, transform_indices = @transform_5, window_bounds = array<i64: 4, 8, 32>}, {pipeline_mode = #tpu.pipeline_mode<synchronous>, transform_indices = @transform_6, window_bounds = array<i64: 1, 32>}, {transform_indices = @transform_7, window_bounds = array<i64: 1, 8, 32>}]} {
    %c0_i32 = arith.constant 0 : i32
    %0 = arith.cmpi eq, %arg1, %c0_i32 : i32
    %1 = arith.extui %0 : i1 to i32
    %c0_i32_0 = arith.constant 0 : i32
    %2 = arith.cmpi ne, %1, %c0_i32_0 : i32
    scf.if %2 {
      %c0_77 = arith.constant 0 : index
      %c0_78 = arith.constant 0 : index
      %c0_79 = arith.constant 0 : index
      %117 = vector.load %arg3[%c0_77, %c0_78, %c0_79] : memref<1x16x32xf32, #tpu.memory_space<vmem>>, vector<1x16x32xf32>
      %118 = vector.shape_cast %117 : vector<1x16x32xf32> to vector<16x32xf32>
      %119 = arith.truncf %118 : vector<16x32xf32> to vector<16x32xbf16>
      %c0_80 = arith.constant 0 : index
      %c0_81 = arith.constant 0 : index
      %c0_82 = arith.constant 0 : index
      %120 = vector.load %arg5[%c0_80, %c0_81, %c0_82] : memref<4x32x8xbf16, #tpu.memory_space<vmem>>, vector<1x32x8xbf16>
      %121 = vector.shape_cast %120 : vector<1x32x8xbf16> to vector<32x8xbf16>
      %cst_83 = arith.constant dense<0.000000e+00> : vector<16x8xf32>
      %122 = tpu.matmul %119, %121, %cst_83 {dimension_numbers = #tpu.dot_dimension_numbers<[1], [0], [0], [1], [0, 0, 1, 1], [], []>} : vector<16x32xbf16>, vector<32x8xbf16>, vector<16x8xf32> -> vector<16x8xf32>
      %123 = arith.truncf %122 : vector<16x8xf32> to vector<16x8xbf16>
      %c0_84 = arith.constant 0 : index
      %c0_85 = arith.constant 0 : index
      %c0_86 = arith.constant 0 : index
      %124 = vector.load %arg10[%c0_84, %c0_85, %c0_86] : memref<4x16x8xbf16, #tpu.memory_space<vmem>>, vector<1x16x8xbf16>
      %125 = vector.shape_cast %124 : vector<1x16x8xbf16> to vector<16x8xbf16>
      %126 = vector.shape_cast %123 : vector<16x8xbf16> to vector<1x16x8xbf16>
      tpu.vector_store %arg10[%c0_84, %c0_85, %c0_86], %126 {strides = array<i32>} : memref<4x16x8xbf16, #tpu.memory_space<vmem>>, vector<1x16x8xbf16>,
      %c0_87 = arith.constant 0 : index
      %c0_88 = arith.constant 0 : index
      %c0_89 = arith.constant 0 : index
      %127 = vector.load %arg6[%c0_87, %c0_88, %c0_89] : memref<4x32x8xbf16, #tpu.memory_space<vmem>>, vector<1x32x8xbf16>
      %128 = vector.shape_cast %127 : vector<1x32x8xbf16> to vector<32x8xbf16>
      %cst_90 = arith.constant dense<0.000000e+00> : vector<16x8xf32>
      %129 = tpu.matmul %119, %128, %cst_90 {dimension_numbers = #tpu.dot_dimension_numbers<[1], [0], [0], [1], [0, 0, 1, 1], [], []>} : vector<16x32xbf16>, vector<32x8xbf16>, vector<16x8xf32> -> vector<16x8xf32>
      %130 = arith.truncf %129 : vector<16x8xf32> to vector<16x8xbf16>
      %c0_91 = arith.constant 0 : index
      %c0_92 = arith.constant 0 : index
      %c0_93 = arith.constant 0 : index
      %131 = vector.load %arg11[%c0_91, %c0_92, %c0_93] : memref<4x16x8xbf16, #tpu.memory_space<vmem>>, vector<1x16x8xbf16>
      %132 = vector.shape_cast %131 : vector<1x16x8xbf16> to vector<16x8xbf16>
      %133 = vector.shape_cast %130 : vector<16x8xbf16> to vector<1x16x8xbf16>
      tpu.vector_store %arg11[%c0_91, %c0_92, %c0_93], %133 {strides = array<i32>} : memref<4x16x8xbf16, #tpu.memory_space<vmem>>, vector<1x16x8xbf16>,
      %c1_94 = arith.constant 1 : index
      %c0_95 = arith.constant 0 : index
      %c0_96 = arith.constant 0 : index
      %134 = vector.load %arg5[%c1_94, %c0_95, %c0_96] : memref<4x32x8xbf16, #tpu.memory_space<vmem>>, vector<1x32x8xbf16>
      %135 = vector.shape_cast %134 : vector<1x32x8xbf16> to vector<32x8xbf16>
      %cst_97 = arith.constant dense<0.000000e+00> : vector<16x8xf32>
      %136 = tpu.matmul %119, %135, %cst_97 {dimension_numbers = #tpu.dot_dimension_numbers<[1], [0], [0], [1], [0, 0, 1, 1], [], []>} : vector<16x32xbf16>, vector<32x8xbf16>, vector<16x8xf32> -> vector<16x8xf32>
      %137 = arith.truncf %136 : vector<16x8xf32> to vector<16x8xbf16>
      %c1_98 = arith.constant 1 : index
      %c0_99 = arith.constant 0 : index
      %c0_100 = arith.constant 0 : index
      %138 = vector.load %arg10[%c1_98, %c0_99, %c0_100] : memref<4x16x8xbf16, #tpu.memory_space<vmem>>, vector<1x16x8xbf16>
      %139 = vector.shape_cast %138 : vector<1x16x8xbf16> to vector<16x8xbf16>
      %140 = vector.shape_cast %137 : vector<16x8xbf16> to vector<1x16x8xbf16>
      tpu.vector_store %arg10[%c1_98, %c0_99, %c0_100], %140 {strides = array<i32>} : memref<4x16x8xbf16, #tpu.memory_space<vmem>>, vector<1x16x8xbf16>,
      %c1_101 = arith.constant 1 : index
      %c0_102 = arith.constant 0 : index
      %c0_103 = arith.constant 0 : index
      %141 = vector.load %arg6[%c1_101, %c0_102, %c0_103] : memref<4x32x8xbf16, #tpu.memory_space<vmem>>, vector<1x32x8xbf16>
      %142 = vector.shape_cast %141 : vector<1x32x8xbf16> to vector<32x8xbf16>
      %cst_104 = arith.constant dense<0.000000e+00> : vector<16x8xf32>
      %143 = tpu.matmul %119, %142, %cst_104 {dimension_numbers = #tpu.dot_dimension_numbers<[1], [0], [0], [1], [0, 0, 1, 1], [], []>} : vector<16x32xbf16>, vector<32x8xbf16>, vector<16x8xf32> -> vector<16x8xf32>
      %144 = arith.truncf %143 : vector<16x8xf32> to vector<16x8xbf16>
      %c1_105 = arith.constant 1 : index
      %c0_106 = arith.constant 0 : index
      %c0_107 = arith.constant 0 : index
      %145 = vector.load %arg11[%c1_105, %c0_106, %c0_107] : memref<4x16x8xbf16, #tpu.memory_space<vmem>>, vector<1x16x8xbf16>
      %146 = vector.shape_cast %145 : vector<1x16x8xbf16> to vector<16x8xbf16>
      %147 = vector.shape_cast %144 : vector<16x8xbf16> to vector<1x16x8xbf16>
      tpu.vector_store %arg11[%c1_105, %c0_106, %c0_107], %147 {strides = array<i32>} : memref<4x16x8xbf16, #tpu.memory_space<vmem>>, vector<1x16x8xbf16>,
      %c2_108 = arith.constant 2 : index
      %c0_109 = arith.constant 0 : index
      %c0_110 = arith.constant 0 : index
      %148 = vector.load %arg5[%c2_108, %c0_109, %c0_110] : memref<4x32x8xbf16, #tpu.memory_space<vmem>>, vector<1x32x8xbf16>
      %149 = vector.shape_cast %148 : vector<1x32x8xbf16> to vector<32x8xbf16>
      %cst_111 = arith.constant dense<0.000000e+00> : vector<16x8xf32>
      %150 = tpu.matmul %119, %149, %cst_111 {dimension_numbers = #tpu.dot_dimension_numbers<[1], [0], [0], [1], [0, 0, 1, 1], [], []>} : vector<16x32xbf16>, vector<32x8xbf16>, vector<16x8xf32> -> vector<16x8xf32>
      %151 = arith.truncf %150 : vector<16x8xf32> to vector<16x8xbf16>
      %c2_112 = arith.constant 2 : index
      %c0_113 = arith.constant 0 : index
      %c0_114 = arith.constant 0 : index
      %152 = vector.load %arg10[%c2_112, %c0_113, %c0_114] : memref<4x16x8xbf16, #tpu.memory_space<vmem>>, vector<1x16x8xbf16>
      %153 = vector.shape_cast %152 : vector<1x16x8xbf16> to vector<16x8xbf16>
      %154 = vector.shape_cast %151 : vector<16x8xbf16> to vector<1x16x8xbf16>
      tpu.vector_store %arg10[%c2_112, %c0_113, %c0_114], %154 {strides = array<i32>} : memref<4x16x8xbf16, #tpu.memory_space<vmem>>, vector<1x16x8xbf16>,
      %c2_115 = arith.constant 2 : index
      %c0_116 = arith.constant 0 : index
      %c0_117 = arith.constant 0 : index
      %155 = vector.load %arg6[%c2_115, %c0_116, %c0_117] : memref<4x32x8xbf16, #tpu.memory_space<vmem>>, vector<1x32x8xbf16>
      %156 = vector.shape_cast %155 : vector<1x32x8xbf16> to vector<32x8xbf16>
      %cst_118 = arith.constant dense<0.000000e+00> : vector<16x8xf32>
      %157 = tpu.matmul %119, %156, %cst_118 {dimension_numbers = #tpu.dot_dimension_numbers<[1], [0], [0], [1], [0, 0, 1, 1], [], []>} : vector<16x32xbf16>, vector<32x8xbf16>, vector<16x8xf32> -> vector<16x8xf32>
      %158 = arith.truncf %157 : vector<16x8xf32> to vector<16x8xbf16>
      %c2_119 = arith.constant 2 : index
      %c0_120 = arith.constant 0 : index
      %c0_121 = arith.constant 0 : index
      %159 = vector.load %arg11[%c2_119, %c0_120, %c0_121] : memref<4x16x8xbf16, #tpu.memory_space<vmem>>, vector<1x16x8xbf16>
      %160 = vector.shape_cast %159 : vector<1x16x8xbf16> to vector<16x8xbf16>
      %161 = vector.shape_cast %158 : vector<16x8xbf16> to vector<1x16x8xbf16>
      tpu.vector_store %arg11[%c2_119, %c0_120, %c0_121], %161 {strides = array<i32>} : memref<4x16x8xbf16, #tpu.memory_space<vmem>>, vector<1x16x8xbf16>,
      %c3_122 = arith.constant 3 : index
      %c0_123 = arith.constant 0 : index
      %c0_124 = arith.constant 0 : index
      %162 = vector.load %arg5[%c3_122, %c0_123, %c0_124] : memref<4x32x8xbf16, #tpu.memory_space<vmem>>, vector<1x32x8xbf16>
      %163 = vector.shape_cast %162 : vector<1x32x8xbf16> to vector<32x8xbf16>
      %cst_125 = arith.constant dense<0.000000e+00> : vector<16x8xf32>
      %164 = tpu.matmul %119, %163, %cst_125 {dimension_numbers = #tpu.dot_dimension_numbers<[1], [0], [0], [1], [0, 0, 1, 1], [], []>} : vector<16x32xbf16>, vector<32x8xbf16>, vector<16x8xf32> -> vector<16x8xf32>
      %165 = arith.truncf %164 : vector<16x8xf32> to vector<16x8xbf16>
      %c3_126 = arith.constant 3 : index
      %c0_127 = arith.constant 0 : index
      %c0_128 = arith.constant 0 : index
      %166 = vector.load %arg10[%c3_126, %c0_127, %c0_128] : memref<4x16x8xbf16, #tpu.memory_space<vmem>>, vector<1x16x8xbf16>
      %167 = vector.shape_cast %166 : vector<1x16x8xbf16> to vector<16x8xbf16>
      %168 = vector.shape_cast %165 : vector<16x8xbf16> to vector<1x16x8xbf16>
      tpu.vector_store %arg10[%c3_126, %c0_127, %c0_128], %168 {strides = array<i32>} : memref<4x16x8xbf16, #tpu.memory_space<vmem>>, vector<1x16x8xbf16>,
      %c3_129 = arith.constant 3 : index
      %c0_130 = arith.constant 0 : index
      %c0_131 = arith.constant 0 : index
      %169 = vector.load %arg6[%c3_129, %c0_130, %c0_131] : memref<4x32x8xbf16, #tpu.memory_space<vmem>>, vector<1x32x8xbf16>
      %170 = vector.shape_cast %169 : vector<1x32x8xbf16> to vector<32x8xbf16>
      %cst_132 = arith.constant dense<0.000000e+00> : vector<16x8xf32>
      %171 = tpu.matmul %119, %170, %cst_132 {dimension_numbers = #tpu.dot_dimension_numbers<[1], [0], [0], [1], [0, 0, 1, 1], [], []>} : vector<16x32xbf16>, vector<32x8xbf16>, vector<16x8xf32> -> vector<16x8xf32>
      %172 = arith.truncf %171 : vector<16x8xf32> to vector<16x8xbf16>
      %c3_133 = arith.constant 3 : index
      %c0_134 = arith.constant 0 : index
      %c0_135 = arith.constant 0 : index
      %173 = vector.load %arg11[%c3_133, %c0_134, %c0_135] : memref<4x16x8xbf16, #tpu.memory_space<vmem>>, vector<1x16x8xbf16>
      %174 = vector.shape_cast %173 : vector<1x16x8xbf16> to vector<16x8xbf16>
      %175 = vector.shape_cast %172 : vector<16x8xbf16> to vector<1x16x8xbf16>
      tpu.vector_store %arg11[%c3_133, %c0_134, %c0_135], %175 {strides = array<i32>} : memref<4x16x8xbf16, #tpu.memory_space<vmem>>, vector<1x16x8xbf16>,
    } else {
    }
    %c0 = arith.constant 0 : index
    %c0_1 = arith.constant 0 : index
    %c0_2 = arith.constant 0 : index
    %3 = vector.load %arg2[%c0, %c0_1, %c0_2] : memref<1x8x32xf32, #tpu.memory_space<vmem>>, vector<1x8x32xf32>
    %4 = vector.shape_cast %3 : vector<1x8x32xf32> to vector<8x32xf32>
    %5 = arith.truncf %4 : vector<8x32xf32> to vector<8x32xbf16>
    %cst = arith.constant 0.000000e+00 : f32
    %6 = vector.broadcast %cst : f32 to vector<8x32xf32>
    %c0_3 = arith.constant 0 : index
    %c0_4 = arith.constant 0 : index
    %c0_5 = arith.constant 0 : index
    %7 = vector.load %arg4[%c0_3, %c0_4, %c0_5] : memref<4x32x8xbf16, #tpu.memory_space<vmem>>, vector<1x32x8xbf16>
    %8 = vector.shape_cast %7 : vector<1x32x8xbf16> to vector<32x8xbf16>
    %cst_6 = arith.constant dense<0.000000e+00> : vector<8x8xf32>
    %9 = tpu.matmul %5, %8, %cst_6 {dimension_numbers = #tpu.dot_dimension_numbers<[1], [0], [0], [1], [0, 0, 1, 1], [], []>} : vector<8x32xbf16>, vector<32x8xbf16>, vector<8x8xf32> -> vector<8x8xf32>
    %c0_7 = arith.constant 0 : index
    %c0_8 = arith.constant 0 : index
    %c0_9 = arith.constant 0 : index
    %10 = vector.load %arg10[%c0_7, %c0_8, %c0_9] : memref<4x16x8xbf16, #tpu.memory_space<vmem>>, vector<1x16x8xbf16>
    %11 = vector.shape_cast %10 : vector<1x16x8xbf16> to vector<16x8xbf16>
    %c0_10 = arith.constant 0 : index
    %c0_11 = arith.constant 0 : index
    %c0_12 = arith.constant 0 : index
    %12 = vector.load %arg11[%c0_10, %c0_11, %c0_12] : memref<4x16x8xbf16, #tpu.memory_space<vmem>>, vector<1x16x8xbf16>
    %13 = vector.shape_cast %12 : vector<1x16x8xbf16> to vector<16x8xbf16>
    %14 = arith.truncf %9 : vector<8x8xf32> to vector<8x8xbf16>
    %cst_13 = arith.constant dense<0.000000e+00> : vector<8x16xf32>
    %15 = tpu.matmul %14, %11, %cst_13 {dimension_numbers = #tpu.dot_dimension_numbers<[1], [1], [0], [0], [0, 0, 1, 0], [], []>} : vector<8x8xbf16>, vector<16x8xbf16>, vector<8x16xf32> -> vector<8x16xf32>
    %cst_14 = arith.constant dense<0xFF800000> : vector<8xf32>
    %16 = vector.multi_reduction <maximumf>, %15, %cst_14 [1] : vector<8x16xf32> to vector<8xf32>
    %17 = vector.shape_cast %16 : vector<8xf32> to vector<8x1xf32>
    %18 = vector.broadcast %17 : vector<8x1xf32> to vector<8x16xf32>
    %19 = arith.subf %15, %18 : vector<8x16xf32>
    %20 = math.exp %19 : vector<8x16xf32>
    %cst_15 = arith.constant dense<0.000000e+00> : vector<8xf32>
    %21 = vector.multi_reduction <add>, %20, %cst_15 [1] : vector<8x16xf32> to vector<8xf32>
    %22 = vector.shape_cast %21 : vector<8xf32> to vector<8x1xf32>
    %23 = tpu.reciprocal %22 : vector<8x1xf32> -> vector<8x1xf32>
    %24 = vector.broadcast %23 : vector<8x1xf32> to vector<8x16xf32>
    %25 = arith.mulf %20, %24 : vector<8x16xf32>
    %26 = arith.truncf %25 : vector<8x16xf32> to vector<8x16xbf16>
    %cst_16 = arith.constant dense<0.000000e+00> : vector<8x8xf32>
    %27 = tpu.matmul %26, %13, %cst_16 {dimension_numbers = #tpu.dot_dimension_numbers<[1], [0], [0], [1], [0, 0, 1, 1], [], []>} : vector<8x16xbf16>, vector<16x8xbf16>, vector<8x8xf32> -> vector<8x8xf32>
    %28 = arith.truncf %27 : vector<8x8xf32> to vector<8x8xbf16>
    %c0_17 = arith.constant 0 : index
    %c0_18 = arith.constant 0 : index
    %c0_19 = arith.constant 0 : index
    %29 = vector.load %arg7[%c0_17, %c0_18, %c0_19] : memref<4x8x32xbf16, #tpu.memory_space<vmem>>, vector<1x8x32xbf16>
    %30 = vector.shape_cast %29 : vector<1x8x32xbf16> to vector<8x32xbf16>
    %cst_20 = arith.constant dense<0.000000e+00> : vector<8x32xf32>
    %31 = tpu.matmul %28, %30, %cst_20 {dimension_numbers = #tpu.dot_dimension_numbers<[1], [0], [0], [1], [0, 0, 1, 1], [], []>} : vector<8x8xbf16>, vector<8x32xbf16>, vector<8x32xf32> -> vector<8x32xf32>
    %32 = arith.addf %6, %31 : vector<8x32xf32>
    %c1 = arith.constant 1 : index
    %c0_21 = arith.constant 0 : index
    %c0_22 = arith.constant 0 : index
    %33 = vector.load %arg4[%c1, %c0_21, %c0_22] : memref<4x32x8xbf16, #tpu.memory_space<vmem>>, vector<1x32x8xbf16>
    %34 = vector.shape_cast %33 : vector<1x32x8xbf16> to vector<32x8xbf16>
    %cst_23 = arith.constant dense<0.000000e+00> : vector<8x8xf32>
    %35 = tpu.matmul %5, %34, %cst_23 {dimension_numbers = #tpu.dot_dimension_numbers<[1], [0], [0], [1], [0, 0, 1, 1], [], []>} : vector<8x32xbf16>, vector<32x8xbf16>, vector<8x8xf32> -> vector<8x8xf32>
    %c1_24 = arith.constant 1 : index
    %c0_25 = arith.constant 0 : index
    %c0_26 = arith.constant 0 : index
    %36 = vector.load %arg10[%c1_24, %c0_25, %c0_26] : memref<4x16x8xbf16, #tpu.memory_space<vmem>>, vector<1x16x8xbf16>
    %37 = vector.shape_cast %36 : vector<1x16x8xbf16> to vector<16x8xbf16>
    %c1_27 = arith.constant 1 : index
    %c0_28 = arith.constant 0 : index
    %c0_29 = arith.constant 0 : index
    %38 = vector.load %arg11[%c1_27, %c0_28, %c0_29] : memref<4x16x8xbf16, #tpu.memory_space<vmem>>, vector<1x16x8xbf16>
    %39 = vector.shape_cast %38 : vector<1x16x8xbf16> to vector<16x8xbf16>
    %40 = arith.truncf %35 : vector<8x8xf32> to vector<8x8xbf16>
    %cst_30 = arith.constant dense<0.000000e+00> : vector<8x16xf32>
    %41 = tpu.matmul %40, %37, %cst_30 {dimension_numbers = #tpu.dot_dimension_numbers<[1], [1], [0], [0], [0, 0, 1, 0], [], []>} : vector<8x8xbf16>, vector<16x8xbf16>, vector<8x16xf32> -> vector<8x16xf32>
    %cst_31 = arith.constant dense<0xFF800000> : vector<8xf32>
    %42 = vector.multi_reduction <maximumf>, %41, %cst_31 [1] : vector<8x16xf32> to vector<8xf32>
    %43 = vector.shape_cast %42 : vector<8xf32> to vector<8x1xf32>
    %44 = vector.broadcast %43 : vector<8x1xf32> to vector<8x16xf32>
    %45 = arith.subf %41, %44 : vector<8x16xf32>
    %46 = math.exp %45 : vector<8x16xf32>
    %cst_32 = arith.constant dense<0.000000e+00> : vector<8xf32>
    %47 = vector.multi_reduction <add>, %46, %cst_32 [1] : vector<8x16xf32> to vector<8xf32>
    %48 = vector.shape_cast %47 : vector<8xf32> to vector<8x1xf32>
    %49 = tpu.reciprocal %48 : vector<8x1xf32> -> vector<8x1xf32>
    %50 = vector.broadcast %49 : vector<8x1xf32> to vector<8x16xf32>
    %51 = arith.mulf %46, %50 : vector<8x16xf32>
    %52 = arith.truncf %51 : vector<8x16xf32> to vector<8x16xbf16>
    %cst_33 = arith.constant dense<0.000000e+00> : vector<8x8xf32>
    %53 = tpu.matmul %52, %39, %cst_33 {dimension_numbers = #tpu.dot_dimension_numbers<[1], [0], [0], [1], [0, 0, 1, 1], [], []>} : vector<8x16xbf16>, vector<16x8xbf16>, vector<8x8xf32> -> vector<8x8xf32>
    %54 = arith.truncf %53 : vector<8x8xf32> to vector<8x8xbf16>
    %c1_34 = arith.constant 1 : index
    %c0_35 = arith.constant 0 : index
    %c0_36 = arith.constant 0 : index
    %55 = vector.load %arg7[%c1_34, %c0_35, %c0_36] : memref<4x8x32xbf16, #tpu.memory_space<vmem>>, vector<1x8x32xbf16>
    %56 = vector.shape_cast %55 : vector<1x8x32xbf16> to vector<8x32xbf16>
    %cst_37 = arith.constant dense<0.000000e+00> : vector<8x32xf32>
    %57 = tpu.matmul %54, %56, %cst_37 {dimension_numbers = #tpu.dot_dimension_numbers<[1], [0], [0], [1], [0, 0, 1, 1], [], []>} : vector<8x8xbf16>, vector<8x32xbf16>, vector<8x32xf32> -> vector<8x32xf32>
    %58 = arith.addf %32, %57 : vector<8x32xf32>
    %c2 = arith.constant 2 : index
    %c0_38 = arith.constant 0 : index
    %c0_39 = arith.constant 0 : index
    %59 = vector.load %arg4[%c2, %c0_38, %c0_39] : memref<4x32x8xbf16, #tpu.memory_space<vmem>>, vector<1x32x8xbf16>
    %60 = vector.shape_cast %59 : vector<1x32x8xbf16> to vector<32x8xbf16>
    %cst_40 = arith.constant dense<0.000000e+00> : vector<8x8xf32>
    %61 = tpu.matmul %5, %60, %cst_40 {dimension_numbers = #tpu.dot_dimension_numbers<[1], [0], [0], [1], [0, 0, 1, 1], [], []>} : vector<8x32xbf16>, vector<32x8xbf16>, vector<8x8xf32> -> vector<8x8xf32>
    %c2_41 = arith.constant 2 : index
    %c0_42 = arith.constant 0 : index
    %c0_43 = arith.constant 0 : index
    %62 = vector.load %arg10[%c2_41, %c0_42, %c0_43] : memref<4x16x8xbf16, #tpu.memory_space<vmem>>, vector<1x16x8xbf16>
    %63 = vector.shape_cast %62 : vector<1x16x8xbf16> to vector<16x8xbf16>
    %c2_44 = arith.constant 2 : index
    %c0_45 = arith.constant 0 : index
    %c0_46 = arith.constant 0 : index
    %64 = vector.load %arg11[%c2_44, %c0_45, %c0_46] : memref<4x16x8xbf16, #tpu.memory_space<vmem>>, vector<1x16x8xbf16>
    %65 = vector.shape_cast %64 : vector<1x16x8xbf16> to vector<16x8xbf16>
    %66 = arith.truncf %61 : vector<8x8xf32> to vector<8x8xbf16>
    %cst_47 = arith.constant dense<0.000000e+00> : vector<8x16xf32>
    %67 = tpu.matmul %66, %63, %cst_47 {dimension_numbers = #tpu.dot_dimension_numbers<[1], [1], [0], [0], [0, 0, 1, 0], [], []>} : vector<8x8xbf16>, vector<16x8xbf16>, vector<8x16xf32> -> vector<8x16xf32>
    %cst_48 = arith.constant dense<0xFF800000> : vector<8xf32>
    %68 = vector.multi_reduction <maximumf>, %67, %cst_48 [1] : vector<8x16xf32> to vector<8xf32>
    %69 = vector.shape_cast %68 : vector<8xf32> to vector<8x1xf32>
    %70 = vector.broadcast %69 : vector<8x1xf32> to vector<8x16xf32>
    %71 = arith.subf %67, %70 : vector<8x16xf32>
    %72 = math.exp %71 : vector<8x16xf32>
    %cst_49 = arith.constant dense<0.000000e+00> : vector<8xf32>
    %73 = vector.multi_reduction <add>, %72, %cst_49 [1] : vector<8x16xf32> to vector<8xf32>
    %74 = vector.shape_cast %73 : vector<8xf32> to vector<8x1xf32>
    %75 = tpu.reciprocal %74 : vector<8x1xf32> -> vector<8x1xf32>
    %76 = vector.broadcast %75 : vector<8x1xf32> to vector<8x16xf32>
    %77 = arith.mulf %72, %76 : vector<8x16xf32>
    %78 = arith.truncf %77 : vector<8x16xf32> to vector<8x16xbf16>
    %cst_50 = arith.constant dense<0.000000e+00> : vector<8x8xf32>
    %79 = tpu.matmul %78, %65, %cst_50 {dimension_numbers = #tpu.dot_dimension_numbers<[1], [0], [0], [1], [0, 0, 1, 1], [], []>} : vector<8x16xbf16>, vector<16x8xbf16>, vector<8x8xf32> -> vector<8x8xf32>
    %80 = arith.truncf %79 : vector<8x8xf32> to vector<8x8xbf16>
    %c2_51 = arith.constant 2 : index
    %c0_52 = arith.constant 0 : index
    %c0_53 = arith.constant 0 : index
    %81 = vector.load %arg7[%c2_51, %c0_52, %c0_53] : memref<4x8x32xbf16, #tpu.memory_space<vmem>>, vector<1x8x32xbf16>
    %82 = vector.shape_cast %81 : vector<1x8x32xbf16> to vector<8x32xbf16>
    %cst_54 = arith.constant dense<0.000000e+00> : vector<8x32xf32>
    %83 = tpu.matmul %80, %82, %cst_54 {dimension_numbers = #tpu.dot_dimension_numbers<[1], [0], [0], [1], [0, 0, 1, 1], [], []>} : vector<8x8xbf16>, vector<8x32xbf16>, vector<8x32xf32> -> vector<8x32xf32>
    %84 = arith.addf %58, %83 : vector<8x32xf32>
    %c3 = arith.constant 3 : index
    %c0_55 = arith.constant 0 : index
    %c0_56 = arith.constant 0 : index
    %85 = vector.load %arg4[%c3, %c0_55, %c0_56] : memref<4x32x8xbf16, #tpu.memory_space<vmem>>, vector<1x32x8xbf16>
    %86 = vector.shape_cast %85 : vector<1x32x8xbf16> to vector<32x8xbf16>
    %cst_57 = arith.constant dense<0.000000e+00> : vector<8x8xf32>
    %87 = tpu.matmul %5, %86, %cst_57 {dimension_numbers = #tpu.dot_dimension_numbers<[1], [0], [0], [1], [0, 0, 1, 1], [], []>} : vector<8x32xbf16>, vector<32x8xbf16>, vector<8x8xf32> -> vector<8x8xf32>
    %c3_58 = arith.constant 3 : index
    %c0_59 = arith.constant 0 : index
    %c0_60 = arith.constant 0 : index
    %88 = vector.load %arg10[%c3_58, %c0_59, %c0_60] : memref<4x16x8xbf16, #tpu.memory_space<vmem>>, vector<1x16x8xbf16>
    %89 = vector.shape_cast %88 : vector<1x16x8xbf16> to vector<16x8xbf16>
    %c3_61 = arith.constant 3 : index
    %c0_62 = arith.constant 0 : index
    %c0_63 = arith.constant 0 : index
    %90 = vector.load %arg11[%c3_61, %c0_62, %c0_63] : memref<4x16x8xbf16, #tpu.memory_space<vmem>>, vector<1x16x8xbf16>
    %91 = vector.shape_cast %90 : vector<1x16x8xbf16> to vector<16x8xbf16>
    %92 = arith.truncf %87 : vector<8x8xf32> to vector<8x8xbf16>
    %cst_64 = arith.constant dense<0.000000e+00> : vector<8x16xf32>
    %93 = tpu.matmul %92, %89, %cst_64 {dimension_numbers = #tpu.dot_dimension_numbers<[1], [1], [0], [0], [0, 0, 1, 0], [], []>} : vector<8x8xbf16>, vector<16x8xbf16>, vector<8x16xf32> -> vector<8x16xf32>
    %cst_65 = arith.constant dense<0xFF800000> : vector<8xf32>
    %94 = vector.multi_reduction <maximumf>, %93, %cst_65 [1] : vector<8x16xf32> to vector<8xf32>
    %95 = vector.shape_cast %94 : vector<8xf32> to vector<8x1xf32>
    %96 = vector.broadcast %95 : vector<8x1xf32> to vector<8x16xf32>
    %97 = arith.subf %93, %96 : vector<8x16xf32>
    %98 = math.exp %97 : vector<8x16xf32>
    %cst_66 = arith.constant dense<0.000000e+00> : vector<8xf32>
    %99 = vector.multi_reduction <add>, %98, %cst_66 [1] : vector<8x16xf32> to vector<8xf32>
    %100 = vector.shape_cast %99 : vector<8xf32> to vector<8x1xf32>
    %101 = tpu.reciprocal %100 : vector<8x1xf32> -> vector<8x1xf32>
    %102 = vector.broadcast %101 : vector<8x1xf32> to vector<8x16xf32>
    %103 = arith.mulf %98, %102 : vector<8x16xf32>
    %104 = arith.truncf %103 : vector<8x16xf32> to vector<8x16xbf16>
    %cst_67 = arith.constant dense<0.000000e+00> : vector<8x8xf32>
    %105 = tpu.matmul %104, %91, %cst_67 {dimension_numbers = #tpu.dot_dimension_numbers<[1], [0], [0], [1], [0, 0, 1, 1], [], []>} : vector<8x16xbf16>, vector<16x8xbf16>, vector<8x8xf32> -> vector<8x8xf32>
    %106 = arith.truncf %105 : vector<8x8xf32> to vector<8x8xbf16>
    %c3_68 = arith.constant 3 : index
    %c0_69 = arith.constant 0 : index
    %c0_70 = arith.constant 0 : index
    %107 = vector.load %arg7[%c3_68, %c0_69, %c0_70] : memref<4x8x32xbf16, #tpu.memory_space<vmem>>, vector<1x8x32xbf16>
    %108 = vector.shape_cast %107 : vector<1x8x32xbf16> to vector<8x32xbf16>
    %cst_71 = arith.constant dense<0.000000e+00> : vector<8x32xf32>
    %109 = tpu.matmul %106, %108, %cst_71 {dimension_numbers = #tpu.dot_dimension_numbers<[1], [0], [0], [1], [0, 0, 1, 1], [], []>} : vector<8x8xbf16>, vector<8x32xbf16>, vector<8x32xf32> -> vector<8x32xf32>
    %110 = arith.addf %84, %109 : vector<8x32xf32>
    %c0_72 = arith.constant 0 : index
    %c0_73 = arith.constant 0 : index
    %111 = vector.load %arg8[%c0_72, %c0_73] : memref<1x32xf32, #tpu.memory_space<vmem>>, vector<1x32xf32>
    %112 = vector.broadcast %111 : vector<1x32xf32> to vector<8x32xf32>
    %113 = arith.addf %110, %112 : vector<8x32xf32>
    %c0_74 = arith.constant 0 : index
    %c0_75 = arith.constant 0 : index
    %c0_76 = arith.constant 0 : index
    %114 = vector.load %arg9[%c0_74, %c0_75, %c0_76] : memref<1x8x32xf32, #tpu.memory_space<vmem>>, vector<1x8x32xf32>
    %115 = vector.shape_cast %114 : vector<1x8x32xf32> to vector<8x32xf32>
    %116 = vector.shape_cast %113 : vector<8x32xf32> to vector<1x8x32xf32>
    tpu.vector_store %arg9[%c0_74, %c0_75, %c0_76], %116 {strides = array<i32>} : memref<1x8x32xf32, #tpu.memory_space<vmem>>, vector<1x8x32xf32>,
    return
  }
  func.func @transform_0(%arg0: i32, %arg1: i32) -> (i32, i32, i32) {
    %c0_i32 = arith.constant 0 : i32
    %c0_i32_0 = arith.constant 0 : i32
    return %arg0, %arg1, %c0_i32 : i32, i32, i32
  }
  func.func @transform_1(%arg0: i32, %arg1: i32) -> (i32, i32, i32) {
    %c0_i32 = arith.constant 0 : i32
    %c0_i32_0 = arith.constant 0 : i32
    %c0_i32_1 = arith.constant 0 : i32
    return %arg0, %c0_i32, %c0_i32_0 : i32, i32, i32
  }
  func.func @transform_2(%arg0: i32, %arg1: i32) -> (i32, i32, i32) {
    %c0_i32 = arith.constant 0 : i32
    %c0_i32_0 = arith.constant 0 : i32
    %c0_i32_1 = arith.constant 0 : i32
    %c0_i32_2 = arith.constant 0 : i32
    return %c0_i32, %c0_i32_0, %c0_i32_1 : i32, i32, i32
  }
  func.func @transform_3(%arg0: i32, %arg1: i32) -> (i32, i32, i32) {
    %c0_i32 = arith.constant 0 : i32
    %c0_i32_0 = arith.constant 0 : i32
    %c0_i32_1 = arith.constant 0 : i32
    %c0_i32_2 = arith.constant 0 : i32
    return %c0_i32, %c0_i32_0, %c0_i32_1 : i32, i32, i32
  }
  func.func @transform_4(%arg0: i32, %arg1: i32) -> (i32, i32, i32) {
    %c0_i32 = arith.constant 0 : i32
    %c0_i32_0 = arith.constant 0 : i32
    %c0_i32_1 = arith.constant 0 : i32
    %c0_i32_2 = arith.constant 0 : i32
    return %c0_i32, %c0_i32_0, %c0_i32_1 : i32, i32, i32
  }
  func.func @transform_5(%arg0: i32, %arg1: i32) -> (i32, i32, i32) {
    %c0_i32 = arith.constant 0 : i32
    %c0_i32_0 = arith.constant 0 : i32
    %c0_i32_1 = arith.constant 0 : i32
    %c0_i32_2 = arith.constant 0 : i32
    return %c0_i32, %c0_i32_0, %c0_i32_1 : i32, i32, i32
  }
  func.func @transform_6(%arg0: i32, %arg1: i32) -> (i32, i32) {
    %c0_i32 = arith.constant 0 : i32
    %c0_i32_0 = arith.constant 0 : i32
    %c0_i32_1 = arith.constant 0 : i32
    return %c0_i32, %c0_i32_0 : i32, i32
  }
  func.func @transform_7(%arg0: i32, %arg1: i32) -> (i32, i32, i32) {
    %c0_i32 = arith.constant 0 : i32
    %c0_i32_0 = arith.constant 0 : i32
    return %arg0, %arg1, %c0_i32 : i32, i32, i32
  }
}

module attributes {stable_mosaic.version = 11 : i64} {
  func.func @_cross_attn_kernel(%arg0: i32, %arg1: i32, %arg2: memref<1x8x32xf32, #tpu.memory_space<vmem>>, %arg3: memref<1x16x32xf32, #tpu.memory_space<vmem>>, %arg4: memref<4x32x8xbf16, #tpu.memory_space<vmem>>, %arg5: memref<4x32x8xbf16, #tpu.memory_space<vmem>>, %arg6: memref<4x32x8xbf16, #tpu.memory_space<vmem>>, %arg7: memref<4x8x32xbf16, #tpu.memory_space<vmem>>, %arg8: memref<1x32xf32, #tpu.memory_space<vmem>>, %arg9: memref<1x8x32xf32, #tpu.memory_space<vmem>>, %arg10: memref<4x16x8xbf16, #tpu.memory_space<vmem>>, %arg11: memref<4x16x8xbf16, #tpu.memory_space<vmem>>) attributes {dimension_semantics = [#tpu.dimension_semantics<parallel>, #tpu.dimension_semantics<arbitrary>], iteration_bounds = array<i64: 2, 2>, scalar_prefetch = 0 : i64, scratch_operands = 2 : i64, tpu.core_type = #tpu.core_type<tc>, window_params = [{transform_indices = @transform_0, window_bounds = array<i64: 1, 8, 32>}, {transform_indices = @transform_1, window_bounds = array<i64: 1, 16, 32>}, {pipeline_mode = #tpu.pipeline_mode<synchronous>, transform_indices = @transform_2, window_bounds = array<i64: 4, 32, 8>}, {pipeline_mode = #tpu.pipeline_mode<synchronous>, transform_indices = @transform_3, window_bounds = array<i64: 4, 32, 8>}, {pipeline_mode = #tpu.pipeline_mode<synchronous>, transform_indices = @transform_4, window_bounds = array<i64: 4, 32, 8>}, {pipeline_mode = #tpu.pipeline_mode<synchronous>, transform_indices = @transform_5, window_bounds = array<i64: 4, 8, 32>}, {pipeline_mode = #tpu.pipeline_mode<synchronous>, transform_indices = @transform_6, window_bounds = array<i64: 1, 32>}, {transform_indices = @transform_7, window_bounds = array<i64: 1, 8, 32>}]} {
    %c0_i32 = arith.constant 0 : i32
    %0 = arith.cmpi eq, %arg1, %c0_i32 : i32
    %1 = arith.extui %0 : i1 to i32
    %c0_i32_0 = arith.constant 0 : i32
    %2 = arith.cmpi ne, %1, %c0_i32_0 : i32
    scf.if %2 {
      %c0_77 = arith.constant 0 : index
      %c0_78 = arith.constant 0 : index
      %c0_79 = arith.constant 0 : index
      %117 = vector.load %arg3[%c0_77, %c0_78, %c0_79] : memref<1x16x32xf32, #tpu.memory_space<vmem>>, vector<1x16x32xf32>
      %118 = vector.shape_cast %117 : vector<1x16x32xf32> to vector<16x32xf32>
      %119 = arith.truncf %118 : vector<16x32xf32> to vector<16x32xbf16>
      %c0_80 = arith.constant 0 : index
      %c0_81 = arith.constant 0 : index
      %c0_82 = arith.constant 0 : index
      %120 = vector.load %arg5[%c0_80, %c0_81, %c0_82] : memref<4x32x8xbf16, #tpu.memory_space<vmem>>, vector<1x32x8xbf16>
      %121 = vector.shape_cast %120 : vector<1x32x8xbf16> to vector<32x8xbf16>
      %cst_83 = arith.constant dense<0.000000e+00> : vector<16x8xf32>
      %122 = tpu.matmul %119, %121, %cst_83 {dimension_numbers = #tpu.dot_dimension_numbers<[1], [0], [0], [1], [0, 0, 1, 1], [], []>} : vector<16x32xbf16>, vector<32x8xbf16>, vector<16x8xf32> -> vector<16x8xf32>
      %123 = arith.truncf %122 : vector<16x8xf32> to vector<16x8xbf16>
      %c0_84 = arith.constant 0 : index
      %c0_85 = arith.constant 0 : index
      %c0_86 = arith.constant 0 : index
      %124 = vector.load %arg10[%c0_84, %c0_85, %c0_86] : memref<4x16x8xbf16, #tpu.memory_space<vmem>>, vector<1x16x8xbf16>
      %125 = vector.shape_cast %124 : vector<1x16x8xbf16> to vector<16x8xbf16>
      %126 = vector.shape_cast %123 : vector<16x8xbf16> to vector<1x16x8xbf16>
      tpu.vector_store %arg10[%c0_84, %c0_85, %c0_86], %126 {strides = array<i32>} : memref<4x16x8xbf16, #tpu.memory_space<vmem>>, vector<1x16x8xbf16>,
      %c0_87 = arith.constant 0 : index
      %c0_88 = arith.constant 0 : index
      %c0_89 = arith.constant 0 : index
      %127 = vector.load %arg6[%c0_87, %c0_88, %c0_89] : memref<4x32x8xbf16, #tpu.memory_space<vmem>>, vector<1x32x8xbf16>
      %128 = vector.shape_cast %127 : vector<1x32x8xbf16> to vector<32x8xbf16>
      %cst_90 = arith.constant dense<0.000000e+00> : vector<16x8xf32>
      %129 = tpu.matmul %119, %128, %cst_90 {dimension_numbers = #tpu.dot_dimension_numbers<[1], [0], [0], [1], [0, 0, 1, 1], [], []>} : vector<16x32xbf16>, vector<32x8xbf16>, vector<16x8xf32> -> vector<16x8xf32>
      %130 = arith.truncf %129 : vector<16x8xf32> to vector<16x8xbf16>
      %c0_91 = arith.constant 0 : index
      %c0_92 = arith.constant 0 : index
      %c0_93 = arith.constant 0 : index
      %131 = vector.load %arg11[%c0_91, %c0_92, %c0_93] : memref<4x16x8xbf16, #tpu.memory_space<vmem>>, vector<1x16x8xbf16>
      %132 = vector.shape_cast %131 : vector<1x16x8xbf16> to vector<16x8xbf16>
      %133 = vector.shape_cast %130 : vector<16x8xbf16> to vector<1x16x8xbf16>
      tpu.vector_store %arg11[%c0_91, %c0_92, %c0_93], %133 {strides = array<i32>} : memref<4x16x8xbf16, #tpu.memory_space<vmem>>, vector<1x16x8xbf16>,
      %c1_94 = arith.constant 1 : index
      %c0_95 = arith.constant 0 : index
      %c0_96 = arith.constant 0 : index
      %134 = vector.load %arg5[%c1_94, %c0_95, %c0_96] : memref<4x32x8xbf16, #tpu.memory_space<vmem>>, vector<1x32x8xbf16>
      %135 = vector.shape_cast %134 : vector<1x32x8xbf16> to vector<32x8xbf16>
      %cst_97 = arith.constant dense<0.000000e+00> : vector<16x8xf32>
      %136 = tpu.matmul %119, %135, %cst_97 {dimension_numbers = #tpu.dot_dimension_numbers<[1], [0], [0], [1], [0, 0, 1, 1], [], []>} : vector<16x32xbf16>, vector<32x8xbf16>, vector<16x8xf32> -> vector<16x8xf32>
      %137 = arith.truncf %136 : vector<16x8xf32> to vector<16x8xbf16>
      %c1_98 = arith.constant 1 : index
      %c0_99 = arith.constant 0 : index
      %c0_100 = arith.constant 0 : index
      %138 = vector.load %arg10[%c1_98, %c0_99, %c0_100] : memref<4x16x8xbf16, #tpu.memory_space<vmem>>, vector<1x16x8xbf16>
      %139 = vector.shape_cast %138 : vector<1x16x8xbf16> to vector<16x8xbf16>
      %140 = vector.shape_cast %137 : vector<16x8xbf16> to vector<1x16x8xbf16>
      tpu.vector_store %arg10[%c1_98, %c0_99, %c0_100], %140 {strides = array<i32>} : memref<4x16x8xbf16, #tpu.memory_space<vmem>>, vector<1x16x8xbf16>,
      %c1_101 = arith.constant 1 : index
      %c0_102 = arith.constant 0 : index
      %c0_103 = arith.constant 0 : index
      %141 = vector.load %arg6[%c1_101, %c0_102, %c0_103] : memref<4x32x8xbf16, #tpu.memory_space<vmem>>, vector<1x32x8xbf16>
      %142 = vector.shape_cast %141 : vector<1x32x8xbf16> to vector<32x8xbf16>
      %cst_104 = arith.constant dense<0.000000e+00> : vector<16x8xf32>
      %143 = tpu.matmul %119, %142, %cst_104 {dimension_numbers = #tpu.dot_dimension_numbers<[1], [0], [0], [1], [0, 0, 1, 1], [], []>} : vector<16x32xbf16>, vector<32x8xbf16>, vector<16x8xf32> -> vector<16x8xf32>
      %144 = arith.truncf %143 : vector<16x8xf32> to vector<16x8xbf16>
      %c1_105 = arith.constant 1 : index
      %c0_106 = arith.constant 0 : index
      %c0_107 = arith.constant 0 : index
      %145 = vector.load %arg11[%c1_105, %c0_106, %c0_107] : memref<4x16x8xbf16, #tpu.memory_space<vmem>>, vector<1x16x8xbf16>
      %146 = vector.shape_cast %145 : vector<1x16x8xbf16> to vector<16x8xbf16>
      %147 = vector.shape_cast %144 : vector<16x8xbf16> to vector<1x16x8xbf16>
      tpu.vector_store %arg11[%c1_105, %c0_106, %c0_107], %147 {strides = array<i32>} : memref<4x16x8xbf16, #tpu.memory_space<vmem>>, vector<1x16x8xbf16>,
      %c2_108 = arith.constant 2 : index
      %c0_109 = arith.constant 0 : index
      %c0_110 = arith.constant 0 : index
      %148 = vector.load %arg5[%c2_108, %c0_109, %c0_110] : memref<4x32x8xbf16, #tpu.memory_space<vmem>>, vector<1x32x8xbf16>
      %149 = vector.shape_cast %148 : vector<1x32x8xbf16> to vector<32x8xbf16>
      %cst_111 = arith.constant dense<0.000000e+00> : vector<16x8xf32>
      %150 = tpu.matmul %119, %149, %cst_111 {dimension_numbers = #tpu.dot_dimension_numbers<[1], [0], [0], [1], [0, 0, 1, 1], [], []>} : vector<16x32xbf16>, vector<32x8xbf16>, vector<16x8xf32> -> vector<16x8xf32>
      %151 = arith.truncf %150 : vector<16x8xf32> to vector<16x8xbf16>
      %c2_112 = arith.constant 2 : index
      %c0_113 = arith.constant 0 : index
      %c0_114 = arith.constant 0 : index
      %152 = vector.load %arg10[%c2_112, %c0_113, %c0_114] : memref<4x16x8xbf16, #tpu.memory_space<vmem>>, vector<1x16x8xbf16>
      %153 = vector.shape_cast %152 : vector<1x16x8xbf16> to vector<16x8xbf16>
      %154 = vector.shape_cast %151 : vector<16x8xbf16> to vector<1x16x8xbf16>
      tpu.vector_store %arg10[%c2_112, %c0_113, %c0_114], %154 {strides = array<i32>} : memref<4x16x8xbf16, #tpu.memory_space<vmem>>, vector<1x16x8xbf16>,
      %c2_115 = arith.constant 2 : index
      %c0_116 = arith.constant 0 : index
      %c0_117 = arith.constant 0 : index
      %155 = vector.load %arg6[%c2_115, %c0_116, %c0_117] : memref<4x32x8xbf16, #tpu.memory_space<vmem>>, vector<1x32x8xbf16>
      %156 = vector.shape_cast %155 : vector<1x32x8xbf16> to vector<32x8xbf16>
      %cst_118 = arith.constant dense<0.000000e+00> : vector<16x8xf32>
      %157 = tpu.matmul %119, %156, %cst_118 {dimension_numbers = #tpu.dot_dimension_numbers<[1], [0], [0], [1], [0, 0, 1, 1], [], []>} : vector<16x32xbf16>, vector<32x8xbf16>, vector<16x8xf32> -> vector<16x8xf32>
      %158 = arith.truncf %157 : vector<16x8xf32> to vector<16x8xbf16>
      %c2_119 = arith.constant 2 : index
      %c0_120 = arith.constant 0 : index
      %c0_121 = arith.constant 0 : index
      %159 = vector.load %arg11[%c2_119, %c0_120, %c0_121] : memref<4x16x8xbf16, #tpu.memory_space<vmem>>, vector<1x16x8xbf16>
      %160 = vector.shape_cast %159 : vector<1x16x8xbf16> to vector<16x8xbf16>
      %161 = vector.shape_cast %158 : vector<16x8xbf16> to vector<1x16x8xbf16>
      tpu.vector_store %arg11[%c2_119, %c0_120, %c0_121], %161 {strides = array<i32>} : memref<4x16x8xbf16, #tpu.memory_space<vmem>>, vector<1x16x8xbf16>,
      %c3_122 = arith.constant 3 : index
      %c0_123 = arith.constant 0 : index
      %c0_124 = arith.constant 0 : index
      %162 = vector.load %arg5[%c3_122, %c0_123, %c0_124] : memref<4x32x8xbf16, #tpu.memory_space<vmem>>, vector<1x32x8xbf16>
      %163 = vector.shape_cast %162 : vector<1x32x8xbf16> to vector<32x8xbf16>
      %cst_125 = arith.constant dense<0.000000e+00> : vector<16x8xf32>
      %164 = tpu.matmul %119, %163, %cst_125 {dimension_numbers = #tpu.dot_dimension_numbers<[1], [0], [0], [1], [0, 0, 1, 1], [], []>} : vector<16x32xbf16>, vector<32x8xbf16>, vector<16x8xf32> -> vector<16x8xf32>
      %165 = arith.truncf %164 : vector<16x8xf32> to vector<16x8xbf16>
      %c3_126 = arith.constant 3 : index
      %c0_127 = arith.constant 0 : index
      %c0_128 = arith.constant 0 : index
      %166 = vector.load %arg10[%c3_126, %c0_127, %c0_128] : memref<4x16x8xbf16, #tpu.memory_space<vmem>>, vector<1x16x8xbf16>
      %167 = vector.shape_cast %166 : vector<1x16x8xbf16> to vector<16x8xbf16>
      %168 = vector.shape_cast %165 : vector<16x8xbf16> to vector<1x16x8xbf16>
      tpu.vector_store %arg10[%c3_126, %c0_127, %c0_128], %168 {strides = array<i32>} : memref<4x16x8xbf16, #tpu.memory_space<vmem>>, vector<1x16x8xbf16>,
      %c3_129 = arith.constant 3 : index
      %c0_130 = arith.constant 0 : index
      %c0_131 = arith.constant 0 : index
      %169 = vector.load %arg6[%c3_129, %c0_130, %c0_131] : memref<4x32x8xbf16, #tpu.memory_space<vmem>>, vector<1x32x8xbf16>
      %170 = vector.shape_cast %169 : vector<1x32x8xbf16> to vector<32x8xbf16>
      %cst_132 = arith.constant dense<0.000000e+00> : vector<16x8xf32>
      %171 = tpu.matmul %119, %170, %cst_132 {dimension_numbers = #tpu.dot_dimension_numbers<[1], [0], [0], [1], [0, 0, 1, 1], [], []>} : vector<16x32xbf16>, vector<32x8xbf16>, vector<16x8xf32> -> vector<16x8xf32>
      %172 = arith.truncf %171 : vector<16x8xf32> to vector<16x8xbf16>
      %c3_133 = arith.constant 3 : index
      %c0_134 = arith.constant 0 : index
      %c0_135 = arith.constant 0 : index
      %173 = vector.load %arg11[%c3_133, %c0_134, %c0_135] : memref<4x16x8xbf16, #tpu.memory_space<vmem>>, vector<1x16x8xbf16>
      %174 = vector.shape_cast %173 : vector<1x16x8xbf16> to vector<16x8xbf16>
      %175 = vector.shape_cast %172 : vector<16x8xbf16> to vector<1x16x8xbf16>
      tpu.vector_store %arg11[%c3_133, %c0_134, %c0_135], %175 {strides = array<i32>} : memref<4x16x8xbf16, #tpu.memory_space<vmem>>, vector<1x16x8xbf16>,
    } else {
    }
    %c0 = arith.constant 0 : index
    %c0_1 = arith.constant 0 : index
    %c0_2 = arith.constant 0 : index
    %3 = vector.load %arg2[%c0, %c0_1, %c0_2] : memref<1x8x32xf32, #tpu.memory_space<vmem>>, vector<1x8x32xf32>
    %4 = vector.shape_cast %3 : vector<1x8x32xf32> to vector<8x32xf32>
    %5 = arith.truncf %4 : vector<8x32xf32> to vector<8x32xbf16>
    %cst = arith.constant 0.000000e+00 : f32
    %6 = vector.broadcast %cst : f32 to vector<8x32xf32>
    %c0_3 = arith.constant 0 : index
    %c0_4 = arith.constant 0 : index
    %c0_5 = arith.constant 0 : index
    %7 = vector.load %arg4[%c0_3, %c0_4, %c0_5] : memref<4x32x8xbf16, #tpu.memory_space<vmem>>, vector<1x32x8xbf16>
    %8 = vector.shape_cast %7 : vector<1x32x8xbf16> to vector<32x8xbf16>
    %cst_6 = arith.constant dense<0.000000e+00> : vector<8x8xf32>
    %9 = tpu.matmul %5, %8, %cst_6 {dimension_numbers = #tpu.dot_dimension_numbers<[1], [0], [0], [1], [0, 0, 1, 1], [], []>} : vector<8x32xbf16>, vector<32x8xbf16>, vector<8x8xf32> -> vector<8x8xf32>
    %c0_7 = arith.constant 0 : index
    %c0_8 = arith.constant 0 : index
    %c0_9 = arith.constant 0 : index
    %10 = vector.load %arg10[%c0_7, %c0_8, %c0_9] : memref<4x16x8xbf16, #tpu.memory_space<vmem>>, vector<1x16x8xbf16>
    %11 = vector.shape_cast %10 : vector<1x16x8xbf16> to vector<16x8xbf16>
    %c0_10 = arith.constant 0 : index
    %c0_11 = arith.constant 0 : index
    %c0_12 = arith.constant 0 : index
    %12 = vector.load %arg11[%c0_10, %c0_11, %c0_12] : memref<4x16x8xbf16, #tpu.memory_space<vmem>>, vector<1x16x8xbf16>
    %13 = vector.shape_cast %12 : vector<1x16x8xbf16> to vector<16x8xbf16>
    %14 = arith.truncf %9 : vector<8x8xf32> to vector<8x8xbf16>
    %cst_13 = arith.constant dense<0.000000e+00> : vector<8x16xf32>
    %15 = tpu.matmul %14, %11, %cst_13 {dimension_numbers = #tpu.dot_dimension_numbers<[1], [1], [0], [0], [0, 0, 1, 0], [], []>} : vector<8x8xbf16>, vector<16x8xbf16>, vector<8x16xf32> -> vector<8x16xf32>
    %cst_14 = arith.constant dense<0xFF800000> : vector<8xf32>
    %16 = vector.multi_reduction <maximumf>, %15, %cst_14 [1] : vector<8x16xf32> to vector<8xf32>
    %17 = vector.shape_cast %16 : vector<8xf32> to vector<8x1xf32>
    %18 = vector.broadcast %17 : vector<8x1xf32> to vector<8x16xf32>
    %19 = arith.subf %15, %18 : vector<8x16xf32>
    %20 = math.exp %19 : vector<8x16xf32>
    %cst_15 = arith.constant dense<0.000000e+00> : vector<8xf32>
    %21 = vector.multi_reduction <add>, %20, %cst_15 [1] : vector<8x16xf32> to vector<8xf32>
    %22 = vector.shape_cast %21 : vector<8xf32> to vector<8x1xf32>
    %23 = tpu.reciprocal %22 : vector<8x1xf32> -> vector<8x1xf32>
    %24 = vector.broadcast %23 : vector<8x1xf32> to vector<8x16xf32>
    %25 = arith.mulf %20, %24 : vector<8x16xf32>
    %26 = arith.truncf %25 : vector<8x16xf32> to vector<8x16xbf16>
    %cst_16 = arith.constant dense<0.000000e+00> : vector<8x8xf32>
    %27 = tpu.matmul %26, %13, %cst_16 {dimension_numbers = #tpu.dot_dimension_numbers<[1], [0], [0], [1], [0, 0, 1, 1], [], []>} : vector<8x16xbf16>, vector<16x8xbf16>, vector<8x8xf32> -> vector<8x8xf32>
    %28 = arith.truncf %27 : vector<8x8xf32> to vector<8x8xbf16>
    %c0_17 = arith.constant 0 : index
    %c0_18 = arith.constant 0 : index
    %c0_19 = arith.constant 0 : index
    %29 = vector.load %arg7[%c0_17, %c0_18, %c0_19] : memref<4x8x32xbf16, #tpu.memory_space<vmem>>, vector<1x8x32xbf16>
    %30 = vector.shape_cast %29 : vector<1x8x32xbf16> to vector<8x32xbf16>
    %cst_20 = arith.constant dense<0.000000e+00> : vector<8x32xf32>
    %31 = tpu.matmul %28, %30, %cst_20 {dimension_numbers = #tpu.dot_dimension_numbers<[1], [0], [0], [1], [0, 0, 1, 1], [], []>} : vector<8x8xbf16>, vector<8x32xbf16>, vector<8x32xf32> -> vector<8x32xf32>
    %32 = arith.addf %6, %31 : vector<8x32xf32>
    %c1 = arith.constant 1 : index
    %c0_21 = arith.constant 0 : index
    %c0_22 = arith.constant 0 : index
    %33 = vector.load %arg4[%c1, %c0_21, %c0_22] : memref<4x32x8xbf16, #tpu.memory_space<vmem>>, vector<1x32x8xbf16>
    %34 = vector.shape_cast %33 : vector<1x32x8xbf16> to vector<32x8xbf16>
    %cst_23 = arith.constant dense<0.000000e+00> : vector<8x8xf32>
    %35 = tpu.matmul %5, %34, %cst_23 {dimension_numbers = #tpu.dot_dimension_numbers<[1], [0], [0], [1], [0, 0, 1, 1], [], []>} : vector<8x32xbf16>, vector<32x8xbf16>, vector<8x8xf32> -> vector<8x8xf32>
    %c1_24 = arith.constant 1 : index
    %c0_25 = arith.constant 0 : index
    %c0_26 = arith.constant 0 : index
    %36 = vector.load %arg10[%c1_24, %c0_25, %c0_26] : memref<4x16x8xbf16, #tpu.memory_space<vmem>>, vector<1x16x8xbf16>
    %37 = vector.shape_cast %36 : vector<1x16x8xbf16> to vector<16x8xbf16>
    %c1_27 = arith.constant 1 : index
    %c0_28 = arith.constant 0 : index
    %c0_29 = arith.constant 0 : index
    %38 = vector.load %arg11[%c1_27, %c0_28, %c0_29] : memref<4x16x8xbf16, #tpu.memory_space<vmem>>, vector<1x16x8xbf16>
    %39 = vector.shape_cast %38 : vector<1x16x8xbf16> to vector<16x8xbf16>
    %40 = arith.truncf %35 : vector<8x8xf32> to vector<8x8xbf16>
    %cst_30 = arith.constant dense<0.000000e+00> : vector<8x16xf32>
    %41 = tpu.matmul %40, %37, %cst_30 {dimension_numbers = #tpu.dot_dimension_numbers<[1], [1], [0], [0], [0, 0, 1, 0], [], []>} : vector<8x8xbf16>, vector<16x8xbf16>, vector<8x16xf32> -> vector<8x16xf32>
    %cst_31 = arith.constant dense<0xFF800000> : vector<8xf32>
    %42 = vector.multi_reduction <maximumf>, %41, %cst_31 [1] : vector<8x16xf32> to vector<8xf32>
    %43 = vector.shape_cast %42 : vector<8xf32> to vector<8x1xf32>
    %44 = vector.broadcast %43 : vector<8x1xf32> to vector<8x16xf32>
    %45 = arith.subf %41, %44 : vector<8x16xf32>
    %46 = math.exp %45 : vector<8x16xf32>
    %cst_32 = arith.constant dense<0.000000e+00> : vector<8xf32>
    %47 = vector.multi_reduction <add>, %46, %cst_32 [1] : vector<8x16xf32> to vector<8xf32>
    %48 = vector.shape_cast %47 : vector<8xf32> to vector<8x1xf32>
    %49 = tpu.reciprocal %48 : vector<8x1xf32> -> vector<8x1xf32>
    %50 = vector.broadcast %49 : vector<8x1xf32> to vector<8x16xf32>
    %51 = arith.mulf %46, %50 : vector<8x16xf32>
    %52 = arith.truncf %51 : vector<8x16xf32> to vector<8x16xbf16>
    %cst_33 = arith.constant dense<0.000000e+00> : vector<8x8xf32>
    %53 = tpu.matmul %52, %39, %cst_33 {dimension_numbers = #tpu.dot_dimension_numbers<[1], [0], [0], [1], [0, 0, 1, 1], [], []>} : vector<8x16xbf16>, vector<16x8xbf16>, vector<8x8xf32> -> vector<8x8xf32>
    %54 = arith.truncf %53 : vector<8x8xf32> to vector<8x8xbf16>
    %c1_34 = arith.constant 1 : index
    %c0_35 = arith.constant 0 : index
    %c0_36 = arith.constant 0 : index
    %55 = vector.load %arg7[%c1_34, %c0_35, %c0_36] : memref<4x8x32xbf16, #tpu.memory_space<vmem>>, vector<1x8x32xbf16>
    %56 = vector.shape_cast %55 : vector<1x8x32xbf16> to vector<8x32xbf16>
    %cst_37 = arith.constant dense<0.000000e+00> : vector<8x32xf32>
    %57 = tpu.matmul %54, %56, %cst_37 {dimension_numbers = #tpu.dot_dimension_numbers<[1], [0], [0], [1], [0, 0, 1, 1], [], []>} : vector<8x8xbf16>, vector<8x32xbf16>, vector<8x32xf32> -> vector<8x32xf32>
    %58 = arith.addf %32, %57 : vector<8x32xf32>
    %c2 = arith.constant 2 : index
    %c0_38 = arith.constant 0 : index
    %c0_39 = arith.constant 0 : index
    %59 = vector.load %arg4[%c2, %c0_38, %c0_39] : memref<4x32x8xbf16, #tpu.memory_space<vmem>>, vector<1x32x8xbf16>
    %60 = vector.shape_cast %59 : vector<1x32x8xbf16> to vector<32x8xbf16>
    %cst_40 = arith.constant dense<0.000000e+00> : vector<8x8xf32>
    %61 = tpu.matmul %5, %60, %cst_40 {dimension_numbers = #tpu.dot_dimension_numbers<[1], [0], [0], [1], [0, 0, 1, 1], [], []>} : vector<8x32xbf16>, vector<32x8xbf16>, vector<8x8xf32> -> vector<8x8xf32>
    %c2_41 = arith.constant 2 : index
    %c0_42 = arith.constant 0 : index
    %c0_43 = arith.constant 0 : index
    %62 = vector.load %arg10[%c2_41, %c0_42, %c0_43] : memref<4x16x8xbf16, #tpu.memory_space<vmem>>, vector<1x16x8xbf16>
    %63 = vector.shape_cast %62 : vector<1x16x8xbf16> to vector<16x8xbf16>
    %c2_44 = arith.constant 2 : index
    %c0_45 = arith.constant 0 : index
    %c0_46 = arith.constant 0 : index
    %64 = vector.load %arg11[%c2_44, %c0_45, %c0_46] : memref<4x16x8xbf16, #tpu.memory_space<vmem>>, vector<1x16x8xbf16>
    %65 = vector.shape_cast %64 : vector<1x16x8xbf16> to vector<16x8xbf16>
    %66 = arith.truncf %61 : vector<8x8xf32> to vector<8x8xbf16>
    %cst_47 = arith.constant dense<0.000000e+00> : vector<8x16xf32>
    %67 = tpu.matmul %66, %63, %cst_47 {dimension_numbers = #tpu.dot_dimension_numbers<[1], [1], [0], [0], [0, 0, 1, 0], [], []>} : vector<8x8xbf16>, vector<16x8xbf16>, vector<8x16xf32> -> vector<8x16xf32>
    %cst_48 = arith.constant dense<0xFF800000> : vector<8xf32>
    %68 = vector.multi_reduction <maximumf>, %67, %cst_48 [1] : vector<8x16xf32> to vector<8xf32>
    %69 = vector.shape_cast %68 : vector<8xf32> to vector<8x1xf32>
    %70 = vector.broadcast %69 : vector<8x1xf32> to vector<8x16xf32>
    %71 = arith.subf %67, %70 : vector<8x16xf32>
    %72 = math.exp %71 : vector<8x16xf32>
    %cst_49 = arith.constant dense<0.000000e+00> : vector<8xf32>
    %73 = vector.multi_reduction <add>, %72, %cst_49 [1] : vector<8x16xf32> to vector<8xf32>
    %74 = vector.shape_cast %73 : vector<8xf32> to vector<8x1xf32>
    %75 = tpu.reciprocal %74 : vector<8x1xf32> -> vector<8x1xf32>
    %76 = vector.broadcast %75 : vector<8x1xf32> to vector<8x16xf32>
    %77 = arith.mulf %72, %76 : vector<8x16xf32>
    %78 = arith.truncf %77 : vector<8x16xf32> to vector<8x16xbf16>
    %cst_50 = arith.constant dense<0.000000e+00> : vector<8x8xf32>
    %79 = tpu.matmul %78, %65, %cst_50 {dimension_numbers = #tpu.dot_dimension_numbers<[1], [0], [0], [1], [0, 0, 1, 1], [], []>} : vector<8x16xbf16>, vector<16x8xbf16>, vector<8x8xf32> -> vector<8x8xf32>
    %80 = arith.truncf %79 : vector<8x8xf32> to vector<8x8xbf16>
    %c2_51 = arith.constant 2 : index
    %c0_52 = arith.constant 0 : index
    %c0_53 = arith.constant 0 : index
    %81 = vector.load %arg7[%c2_51, %c0_52, %c0_53] : memref<4x8x32xbf16, #tpu.memory_space<vmem>>, vector<1x8x32xbf16>
    %82 = vector.shape_cast %81 : vector<1x8x32xbf16> to vector<8x32xbf16>
    %cst_54 = arith.constant dense<0.000000e+00> : vector<8x32xf32>
    %83 = tpu.matmul %80, %82, %cst_54 {dimension_numbers = #tpu.dot_dimension_numbers<[1], [0], [0], [1], [0, 0, 1, 1], [], []>} : vector<8x8xbf16>, vector<8x32xbf16>, vector<8x32xf32> -> vector<8x32xf32>
    %84 = arith.addf %58, %83 : vector<8x32xf32>
    %c3 = arith.constant 3 : index
    %c0_55 = arith.constant 0 : index
    %c0_56 = arith.constant 0 : index
    %85 = vector.load %arg4[%c3, %c0_55, %c0_56] : memref<4x32x8xbf16, #tpu.memory_space<vmem>>, vector<1x32x8xbf16>
    %86 = vector.shape_cast %85 : vector<1x32x8xbf16> to vector<32x8xbf16>
    %cst_57 = arith.constant dense<0.000000e+00> : vector<8x8xf32>
    %87 = tpu.matmul %5, %86, %cst_57 {dimension_numbers = #tpu.dot_dimension_numbers<[1], [0], [0], [1], [0, 0, 1, 1], [], []>} : vector<8x32xbf16>, vector<32x8xbf16>, vector<8x8xf32> -> vector<8x8xf32>
    %c3_58 = arith.constant 3 : index
    %c0_59 = arith.constant 0 : index
    %c0_60 = arith.constant 0 : index
    %88 = vector.load %arg10[%c3_58, %c0_59, %c0_60] : memref<4x16x8xbf16, #tpu.memory_space<vmem>>, vector<1x16x8xbf16>
    %89 = vector.shape_cast %88 : vector<1x16x8xbf16> to vector<16x8xbf16>
    %c3_61 = arith.constant 3 : index
    %c0_62 = arith.constant 0 : index
    %c0_63 = arith.constant 0 : index
    %90 = vector.load %arg11[%c3_61, %c0_62, %c0_63] : memref<4x16x8xbf16, #tpu.memory_space<vmem>>, vector<1x16x8xbf16>
    %91 = vector.shape_cast %90 : vector<1x16x8xbf16> to vector<16x8xbf16>
    %92 = arith.truncf %87 : vector<8x8xf32> to vector<8x8xbf16>
    %cst_64 = arith.constant dense<0.000000e+00> : vector<8x16xf32>
    %93 = tpu.matmul %92, %89, %cst_64 {dimension_numbers = #tpu.dot_dimension_numbers<[1], [1], [0], [0], [0, 0, 1, 0], [], []>} : vector<8x8xbf16>, vector<16x8xbf16>, vector<8x16xf32> -> vector<8x16xf32>
    %cst_65 = arith.constant dense<0xFF800000> : vector<8xf32>
    %94 = vector.multi_reduction <maximumf>, %93, %cst_65 [1] : vector<8x16xf32> to vector<8xf32>
    %95 = vector.shape_cast %94 : vector<8xf32> to vector<8x1xf32>
    %96 = vector.broadcast %95 : vector<8x1xf32> to vector<8x16xf32>
    %97 = arith.subf %93, %96 : vector<8x16xf32>
    %98 = math.exp %97 : vector<8x16xf32>
    %cst_66 = arith.constant dense<0.000000e+00> : vector<8xf32>
    %99 = vector.multi_reduction <add>, %98, %cst_66 [1] : vector<8x16xf32> to vector<8xf32>
    %100 = vector.shape_cast %99 : vector<8xf32> to vector<8x1xf32>
    %101 = tpu.reciprocal %100 : vector<8x1xf32> -> vector<8x1xf32>
    %102 = vector.broadcast %101 : vector<8x1xf32> to vector<8x16xf32>
    %103 = arith.mulf %98, %102 : vector<8x16xf32>
    %104 = arith.truncf %103 : vector<8x16xf32> to vector<8x16xbf16>
    %cst_67 = arith.constant dense<0.000000e+00> : vector<8x8xf32>
    %105 = tpu.matmul %104, %91, %cst_67 {dimension_numbers = #tpu.dot_dimension_numbers<[1], [0], [0], [1], [0, 0, 1, 1], [], []>} : vector<8x16xbf16>, vector<16x8xbf16>, vector<8x8xf32> -> vector<8x8xf32>
    %106 = arith.truncf %105 : vector<8x8xf32> to vector<8x8xbf16>
    %c3_68 = arith.constant 3 : index
    %c0_69 = arith.constant 0 : index
    %c0_70 = arith.constant 0 : index
    %107 = vector.load %arg7[%c3_68, %c0_69, %c0_70] : memref<4x8x32xbf16, #tpu.memory_space<vmem>>, vector<1x8x32xbf16>
    %108 = vector.shape_cast %107 : vector<1x8x32xbf16> to vector<8x32xbf16>
    %cst_71 = arith.constant dense<0.000000e+00> : vector<8x32xf32>
    %109 = tpu.matmul %106, %108, %cst_71 {dimension_numbers = #tpu.dot_dimension_numbers<[1], [0], [0], [1], [0, 0, 1, 1], [], []>} : vector<8x8xbf16>, vector<8x32xbf16>, vector<8x32xf32> -> vector<8x32xf32>
    %110 = arith.addf %84, %109 : vector<8x32xf32>
    %c0_72 = arith.constant 0 : index
    %c0_73 = arith.constant 0 : index
    %111 = vector.load %arg8[%c0_72, %c0_73] : memref<1x32xf32, #tpu.memory_space<vmem>>, vector<1x32xf32>
    %112 = vector.broadcast %111 : vector<1x32xf32> to vector<8x32xf32>
    %113 = arith.addf %110, %112 : vector<8x32xf32>
    %c0_74 = arith.constant 0 : index
    %c0_75 = arith.constant 0 : index
    %c0_76 = arith.constant 0 : index
    %114 = vector.load %arg9[%c0_74, %c0_75, %c0_76] : memref<1x8x32xf32, #tpu.memory_space<vmem>>, vector<1x8x32xf32>
    %115 = vector.shape_cast %114 : vector<1x8x32xf32> to vector<8x32xf32>
    %116 = vector.shape_cast %113 : vector<8x32xf32> to vector<1x8x32xf32>
    tpu.vector_store %arg9[%c0_74, %c0_75, %c0_76], %116 {strides = array<i32>} : memref<1x8x32xf32, #tpu.memory_space<vmem>>, vector<1x8x32xf32>,
    return
  }
  func.func @transform_0(%arg0: i32, %arg1: i32) -> (i32, i32, i32) {
    %c0_i32 = arith.constant 0 : i32
    %c0_i32_0 = arith.constant 0 : i32
    return %arg0, %arg1, %c0_i32 : i32, i32, i32
  }
  func.func @transform_1(%arg0: i32, %arg1: i32) -> (i32, i32, i32) {
    %c0_i32 = arith.constant 0 : i32
    %c0_i32_0 = arith.constant 0 : i32
    %c0_i32_1 = arith.constant 0 : i32
    return %arg0, %c0_i32, %c0_i32_0 : i32, i32, i32
  }
  func.func @transform_2(%arg0: i32, %arg1: i32) -> (i32, i32, i32) {
    %c0_i32 = arith.constant 0 : i32
    %c0_i32_0 = arith.constant 0 : i32
    %c0_i32_1 = arith.constant 0 : i32
    %c0_i32_2 = arith.constant 0 : i32
    return %c0_i32, %c0_i32_0, %c0_i32_1 : i32, i32, i32
  }
  func.func @transform_3(%arg0: i32, %arg1: i32) -> (i32, i32, i32) {
    %c0_i32 = arith.constant 0 : i32
    %c0_i32_0 = arith.constant 0 : i32
    %c0_i32_1 = arith.constant 0 : i32
    %c0_i32_2 = arith.constant 0 : i32
    return %c0_i32, %c0_i32_0, %c0_i32_1 : i32, i32, i32
  }
  func.func @transform_4(%arg0: i32, %arg1: i32) -> (i32, i32, i32) {
    %c0_i32 = arith.constant 0 : i32
    %c0_i32_0 = arith.constant 0 : i32
    %c0_i32_1 = arith.constant 0 : i32
    %c0_i32_2 = arith.constant 0 : i32
    return %c0_i32, %c0_i32_0, %c0_i32_1 : i32, i32, i32
  }
  func.func @transform_5(%arg0: i32, %arg1: i32) -> (i32, i32, i32) {
    %c0_i32 = arith.constant 0 : i32
    %c0_i32_0 = arith.constant 0 : i32
    %c0_i32_1 = arith.constant 0 : i32
    %c0_i32_2 = arith.constant 0 : i32
    return %c0_i32, %c0_i32_0, %c0_i32_1 : i32, i32, i32
  }
  func.func @transform_6(%arg0: i32, %arg1: i32) -> (i32, i32) {
    %c0_i32 = arith.constant 0 : i32
    %c0_i32_0 = arith.constant 0 : i32
    %c0_i32_1 = arith.constant 0 : i32
    return %c0_i32, %c0_i32_0 : i32, i32
  }
  func.func @transform_7(%arg0: i32, %arg1: i32) -> (i32, i32, i32) {
    %c0_i32 = arith.constant 0 : i32
    %c0_i32_0 = arith.constant 0 : i32
    return %arg0, %arg1, %c0_i32 : i32, i32, i32
  }
}

</mosaic_0001>

<bundles_post_ra>
// kernel: tpu_custom_call.1
= control target key start
LH: loop header
LB: loop body
LE: loop exit
PB: predicated region body
PF: predicated region fallthrough
CT: control target
= control target key end

     0   :  { %12 = vsyncpa [#allocation5], 0  ;;  %s2762_s0 = inlined_call_operand.vmem [shape: f32[2,16,32], index: 0, kind: input, shape index: {}]   ;;  %s2763_s1 = inlined_call_operand.vmem [shape: f32[2,16,32], index: 1, kind: input, shape index: {}]   ;;  %s2764_s2 = inlined_call_operand.vmem [shape: bf16[4,32,8], index: 2, kind: input, shape index: {}]   ;;  %s2765_s3 = inlined_call_operand.vmem [shape: bf16[4,32,8], index: 3, kind: input, shape index: {}]   ;;  %s2766_s4 = inlined_call_operand.vmem [shape: bf16[4,32,8], index: 4, kind: input, shape index: {}]   ;;  %s2767_s5 = inlined_call_operand.vmem [shape: bf16[4,8,32], index: 5, kind: input, shape index: {}]   ;;  %s2768_s6 = inlined_call_operand.vmem [shape: f32[1,32], index: 6, kind: input, shape index: {}]   ;;  %s2769_s7 = inlined_call_operand.hbm [shape: f32[2,16,32], index: 7, kind: output, shape index: {}]  }
   0x1   :  { %14 = vsyncpa [#allocation5 + $0x1], 0  ;;  %s2378_s24 = smov 0   ;;  %s2380_s25 = smov 0  }
   0x2   :  { %s2382_s26 = smov 0   ;;  %s2384_s27 = smov 0  }
   0x3   :  { %s2386_s28 = smov 0   ;;  %s2388_s29 = smov 0  }
   0x4   :  { %s2390_s30 = smov 0   ;;  %s2392_s8 = smov 0  }
   0x5 LB: > { %2776 = sst [smem:[#allocation7_spill]] %s2311_s26  ;;  %s1789_s9 = sadd.s32 4294967295, %s2331_s8   ;;  %s2331_s8 = sphi %s2392_s8, %s20_s8   ;;  %s2327_s30 = sphi %s2390_s30, %s2790_s30   ;;  %s2323_s29 = sphi %s2388_s29, %s2789_s29   ;;  %s2319_s28 = sphi %s2386_s28, %s2788_s28   ;;  %s2315_s27 = sphi %s2384_s27, %s2787_s27   ;;  %s2311_s26 = sphi %s2382_s26, %s2786_s26   ;;  %s2307_s25 = sphi %s2380_s25, %s2792_s25   ;;  %s2303_s24 = sphi %s2378_s24, %s2791_s24  }
   0x6   : > { %2777 = sst [smem:[#allocation8_spill]] %s2323_s29  ;;  %s1790_s10 = sadd.s32 4294967294, %s2331_s8  }
   0x7   : > { %2778 = sst [smem:[#allocation9_spill]] %s2327_s30  ;;  %s29_s11 = sadd.s32 1, %s2323_s29 }
   0x8   : > { %p30_p0 = scmp.ge.s32.totalorder %s29_s11, 2  ;;  %s32_s12 = sadd.s32 1, %s2327_s30 }
   0x9   : > { %p210_p1 = scmp.ne.s32.totalorder %s2311_s26, %s2307_s25  ;;  %p211_p2 = scmp.eq.s32.totalorder %s1789_s9, 3 }
   0xa   : > { %s2794_s11 = smov (%p30_p0, %s29_s11), 0  ;;  %s2796_s12 = smov (!%p30_p0, %s32_s12), %s2327_s30 }
   0xb   : > { %2779 = sst [smem:[#allocation10_spill]] %s2794_s11  ;;  %s196_s13 = ssub.s32 %s2323_s29, %s2794_s11 }
   0xc   : > { %p2429_p3 = por %p211_p2, %p210_p1  ;;  %p34_p4 = scmp.ge.s32.totalorder %s2796_s12, 2 }
   0xd   : > { %p216_p5 = scmp.ne.s32.totalorder %s2307_s25, %s2303_s24  ;;  %p217_p6 = scmp.eq.s32.totalorder %s1790_s10, 3 }
   0xe   : > { %p1793_p7 = scmp.ge.s32.totalorder %s2331_s8, 1  ;;  %s2798_s12 = smov (%p34_p4, %s2796_s12), 0 }
   0xf   : > { %2781 = sst [smem:[#allocation11_spill]] %s2798_s12  ;;  %p2438_p8 = por %p217_p6, %p216_p5 }
  0x10   : > { %p269_p9 = scmp.lt.s32.totalorder %s2331_s8, 5  ;;  %s195_s16 = ssub.s32 %s2327_s30, %s2798_s12 }
  0x11   : > { %s200_s17 = sadd.s32 1, %s2311_s26  ;;  %s197_s18 = sor.u32 %s196_s13, %s195_s16 }
  0x12   : > { %p270_p10 = pnand %p1793_p7, %p269_p9  ;;  %p198_p11 = scmp.eq.s32.totalorder %s197_s18, 0 }
  0x13   : > { %s2774_s20 = sand.u32 (!%p270_p10), 1, %s2307_s25   ;;  %p309_p12 = scmp.lt.s32.totalorder (!%p270_p10), %s2319_s28, 1 }
  0x14   : > { %s2447_s19 = scalar_select %p198_p11, %s2311_s26, %s200_s17  }
  0x15   : > { %273 = sbr.rel (%p270_p10) target bundleno = 3726 (0xe8e), region = 48  ;;  %s2453_s21 = sshll.u32 (!%p270_p10), %s2774_s20, 3 }
  0x16   : > { %2783 = sst [smem:[#allocation12_spill]] %s2447_s19  ;;  %p311_p13 = scmp.lt.s32.totalorder (!%p270_p10), %s2315_s27, 1 }
  0x17   : > { %s308_s19 = scalar_lea.vmem (!%p270_p10), [#allocation4], %s2453_s21  ;;  %p1799_p0 = scmp.ne.s32.totalorder (!%p270_p10), %s2315_s27, 0 }
  0x1c   : > { %s310_s22 = scalar_select %p309_p12, %s2319_s28, 1 }
  0x1d   : > { %s312_s23 = scalar_select %p311_p13, %s2315_s27, 1 }
  0x1e   : > { %s1795_s9 = sshll.u32 %s310_s22, 1  ;;  %s1893_s10 = sshll.u32 %s310_s22, 4  ;;  %v2197_v0 = vld [vmem:[%s2765_s3] sm:$0xff] (!%p1799_p0)   ;;  %v2333_v1 = vmov (!%p1799_p0), 0.0   ;;  %v2199_v3 = vld [vmem:[%s2765_s3 + $0x8] sm:$0xff] (!%p1799_p0)   ;;  %vm2334_vm0 = vmmov (!%p1799_p0), 0  }
  0x1f   : > { %s314_s13 = sadd.s32 %s1795_s9, %s312_s23  ;;  %s321_s18 = scalar_lea.vmem %s2763_s1, %s1893_s10  ;;  %1954 = vmatprep.subr.bf16.mxu0 (!%p1799_p0), %v2333_v1  ;;  %1962 = vmatprep.subr.bf16.mxu1 (!%p1799_p0), %v2333_v1  ;;  %v2198_v2 = vld [vmem:[%s2766_s4] sm:$0xff] (!%p1799_p0)   ;;  %v2200_v4 = vld [vmem:[%s2766_s4 + $0x8] sm:$0xff] (!%p1799_p0)   ;;  %vm346_vm1 = vcmask (!%p1799_p0), 261120   ;;  %v2201_v8 = vld [vmem:[%s2765_s3 + $0x10] sm:$0xff] (!%p1799_p0)   ;;  %vm392_vm2 = vcmask (!%p1799_p0), 64512  }
  0x20   : > { %s1796_s12 = sshll.u32 %s314_s13, 3  ;;  %326 = sbr.rel (%p1799_p0) target bundleno = 281 (0x119), region = 52  ;;  %1955 = vmatpush3.bf16.msra.mxu0 (!%p1799_p0), %v2197_v0  ;;  %1958 = vmatprep.mubr.msk.bf16.mxu0 (!%p1799_p0), %vm2334_vm0, %v2333_v1  ;;  %v327_v5 = vld [vmem:[%s321_s18] sm:$0xff] (!%p1799_p0)  ;;  %v328_v6 = vld [vmem:[%s321_s18 + $0x8] sm:$0xff] (!%p1799_p0)  ;;  %v2202_v9 = vld [vmem:[%s2766_s4 + $0x10] sm:$0xff] (!%p1799_p0)  }
  0x21   : > { %s2464_s29 = scalar_lea.vmem %s2762_s0, %s1796_s12  ;;  %1963 = vmatpush3.bf16.msra.mxu1 (!%p1799_p0), %v2198_v2  ;;  %1956 = vmatprep.subr.bf16.mxu0 (!%p1799_p0), %v2333_v1  ;;  %v329_v7 = vpack.c.bf16 (!%p1799_p0), %v328_v6, %v327_v5  ;;  %v2203_v10 = vld [vmem:[%s2765_s3 + $0x18] sm:$0xff] (!%p1799_p0)   ;;  %v2205_v12 = vld [vmem:[%s2765_s3 + $0x20] sm:$0xff] (!%p1799_p0)   ;;  %v2207_v14 = vld [vmem:[%s2765_s3 + $0x28] sm:$0xff] (!%p1799_p0)  }
  0x22   : > { %1964 = vmatprep.subr.bf16.mxu1 (!%p1799_p0), %v2333_v1  ;;  %1966 = vmatprep.mubr.msk.bf16.mxu1 (!%p1799_p0), %vm2334_vm0, %v2333_v1  ;;  %v2204_v11 = vld [vmem:[%s2766_s4 + $0x18] sm:$0xff] (!%p1799_p0)   ;;  %v2206_v13 = vld [vmem:[%s2766_s4 + $0x20] sm:$0xff] (!%p1799_p0)   ;;  %v2208_v15 = vld [vmem:[%s2766_s4 + $0x28] sm:$0xff] (!%p1799_p0)  }
  0x23   : > { %v2209_v16 = vld [vmem:[%s2765_s3 + $0x30] sm:$0xff] (!%p1799_p0)   ;;  %v2211_v18 = vld [vmem:[%s2765_s3 + $0x38] sm:$0xff] (!%p1799_p0)  }
  0x24   : > { %1957 = vmatpush3.bf16.msra.mxu0 (!%p1799_p0), %v2199_v3  ;;  %v2210_v17 = vld [vmem:[%s2766_s4 + $0x30] sm:$0xff] (!%p1799_p0)   ;;  %v2212_v19 = vld [vmem:[%s2766_s4 + $0x38] sm:$0xff] (!%p1799_p0)  }
  0x25   : > { %1965 = vmatpush3.bf16.msra.mxu1 (!%p1799_p0), %v2200_v4  ;;  %1970 = vmatprep.subr.bf16.mxu0 (!%p1799_p0), %v2333_v1 }
  0x26   : > { %1978 = vmatprep.subr.bf16.mxu1 (!%p1799_p0), %v2333_v1 }
  0x27   : > { %1959 = vmatmul.mubr.msk.bf16.vlgmr.msra.gmra.mrb[0].mxu0 %vm346_vm1, %v329_v7 }
  0x28   : > { %1967 = vmatmul.mubr.msk.bf16.vlgmr.msra.gmra.mrb[0].mxu1 %vm346_vm1, %v329_v7  ;;  %1971 = vmatpush3.bf16.msra.mxu0 %v2201_v8 }
  0x29   : > { %1979 = vmatpush3.bf16.msra.mxu1 %v2202_v9  ;;  %1972 = vmatprep.subr.bf16.mxu0 %v2333_v1 }
  0x2a   : > { %1980 = vmatprep.subr.bf16.mxu1 %v2333_v1  ;;  %1974 = vmatprep.mubr.msk.bf16.mxu0 %vm2334_vm0, %v2333_v1 }
  0x2b   : > { %1982 = vmatprep.mubr.msk.bf16.mxu1 %vm2334_vm0, %v2333_v1 }
  0x2c   : > { %1973 = vmatpush3.bf16.msra.mxu0 %v2203_v10 }
  0x2d   : > { %1981 = vmatpush3.bf16.msra.mxu1 %v2204_v11  ;;  %1986 = vmatprep.subr.bf16.mxu0 %v2333_v1 }
  0x2e   : > { %1994 = vmatprep.subr.bf16.mxu1 %v2333_v1 }
  0x2f   : > { %1975 = vmatmul.mubr.msk.bf16.vlgmr.msra.gmra.mrb[4].mxu0 %vm346_vm1, %v329_v7 }
  0x30   : > { %1983 = vmatmul.mubr.msk.bf16.vlgmr.msra.gmra.mrb[4].mxu1 %vm346_vm1, %v329_v7  ;;  %1987 = vmatpush3.bf16.msra.mxu0 %v2205_v12 }
  0x31   : > { %1995 = vmatpush3.bf16.msra.mxu1 %v2206_v13  ;;  %1988 = vmatprep.subr.bf16.mxu0 %v2333_v1 }
  0x32   : > { %1996 = vmatprep.subr.bf16.mxu1 %v2333_v1  ;;  %1990 = vmatprep.mubr.msk.bf16.mxu0 %vm2334_vm0, %v2333_v1 }
  0x33   : > { %1998 = vmatprep.mubr.msk.bf16.mxu1 %vm2334_vm0, %v2333_v1 }
  0x34   : > { %1989 = vmatpush3.bf16.msra.mxu0 %v2207_v14 }
  0x35   : > { %1997 = vmatpush3.bf16.msra.mxu1 %v2208_v15  ;;  %2002 = vmatprep.subr.bf16.mxu0 %v2333_v1 }
  0x36   : > { %2010 = vmatprep.subr.bf16.mxu1 %v2333_v1 }
  0x37   : > { %1991 = vmatmul.mubr.msk.bf16.vlgmr.msra.gmra.mrb[8].mxu0 %vm346_vm1, %v329_v7 }
  0x38   : > { %1999 = vmatmul.mubr.msk.bf16.vlgmr.msra.gmra.mrb[8].mxu1 %vm346_vm1, %v329_v7  ;;  %2003 = vmatpush3.bf16.msra.mxu0 %v2209_v16 }
  0x39   : > { %2011 = vmatpush3.bf16.msra.mxu1 %v2210_v17  ;;  %2004 = vmatprep.subr.bf16.mxu0 %v2333_v1 }
  0x3a   : > { %2012 = vmatprep.subr.bf16.mxu1 %v2333_v1  ;;  %2006 = vmatprep.mubr.msk.bf16.mxu0 %vm2334_vm0, %v2333_v1 }
  0x3b   : > { %2014 = vmatprep.mubr.msk.bf16.mxu1 %vm2334_vm0, %v2333_v1 }
  0x3c   : > { %2005 = vmatpush3.bf16.msra.mxu0 %v2211_v18 }
  0x3d   : > { %2013 = vmatpush3.bf16.msra.mxu1 %v2212_v19 }
  0x3f   : > { %2007 = vmatmul.mubr.msk.bf16.vlgmr.msra.gmra.mrb[12].mxu0 %vm346_vm1, %v329_v7 }
  0x40   : > { %2015 = vmatmul.mubr.msk.bf16.vlgmr.msra.gmra.mrb[12].mxu1 %vm346_vm1, %v329_v7 }
  0xfa   : > { %v384_v20 = vpop.f32.mrb[0].mxu0 }
  0xfb   : > { %v444_v21 = vpop.f32.mrb[0].mxu1  ;;  %v1960_v22 = vpop.f32.mrb[1].mxu0 }
  0xfc   : > { %v1968_v23 = vpop.f32.mrb[1].mxu1  ;;  %v387_v24 = vpop.f32.mrb[2].mxu0 }
  0xfd   : > { %v391_v25 = vpack.c.bf16 %v387_v24, %v384_v20  ;;  %v447_v26 = vpop.f32.mrb[2].mxu1  ;;  %v1961_v27 = vpop.f32.mrb[3].mxu0 }
  0xfe   : > { %v451_v28 = vpack.c.bf16 %v447_v26, %v444_v21  ;;  %v1969_v29 = vpop.f32.mrb[3].mxu1 }
  0xff   : > { %393 = vst.msk [vmem:[#allocation2] sm:$0xff] %vm392_vm2, %v391_v25 }
 0x100   : > { %452 = vst.msk [vmem:[#allocation3] sm:$0xff] %vm392_vm2, %v451_v28 }
 0x102   : > { %v504_v30 = vpop.f32.mrb[4].mxu0 }
 0x103   : > { %v565_v31 = vpop.f32.mrb[4].mxu1  ;;  %v1976_v32 = vpop.f32.mrb[5].mxu0 }
 0x104   : > { %v1984_v33 = vpop.f32.mrb[5].mxu1  ;;  %v507_v34 = vpop.f32.mrb[6].mxu0 }
 0x105   : > { %v511_v35 = vpack.c.bf16 %v507_v34, %v504_v30  ;;  %v568_v36 = vpop.f32.mrb[6].mxu1  ;;  %v1977_v37 = vpop.f32.mrb[7].mxu0 }
 0x106   : > { %v572_v38 = vpack.c.bf16 %v568_v36, %v565_v31  ;;  %v1985_v39 = vpop.f32.mrb[7].mxu1 }
 0x107   : > { %513 = vst.msk [vmem:[#allocation2 + $0x8] sm:$0xff] %vm392_vm2, %v511_v35 }
 0x108   : > { %574 = vst.msk [vmem:[#allocation3 + $0x8] sm:$0xff] %vm392_vm2, %v572_v38 }
 0x10a   : > { %v626_v40 = vpop.f32.mrb[8].mxu0 }
 0x10b   : > { %v687_v41 = vpop.f32.mrb[8].mxu1  ;;  %v1992_v42 = vpop.f32.mrb[9].mxu0 }
 0x10c   : > { %v2000_v43 = vpop.f32.mrb[9].mxu1  ;;  %v629_v44 = vpop.f32.mrb[10].mxu0 }
 0x10d   : > { %v633_v45 = vpack.c.bf16 %v629_v44, %v626_v40  ;;  %v690_v46 = vpop.f32.mrb[10].mxu1  ;;  %v1993_v47 = vpop.f32.mrb[11].mxu0 }
 0x10e   : > { %v694_v48 = vpack.c.bf16 %v690_v46, %v687_v41  ;;  %v2001_v49 = vpop.f32.mrb[11].mxu1 }
 0x10f   : > { %635 = vst.msk [vmem:[#allocation2 + $0x10] sm:$0xff] %vm392_vm2, %v633_v45 }
 0x110   : > { %696 = vst.msk [vmem:[#allocation3 + $0x10] sm:$0xff] %vm392_vm2, %v694_v48 }
 0x112   : > { %v748_v50 = vpop.f32.mrb[12].mxu0 }
 0x113   : > { %v809_v51 = vpop.f32.mrb[12].mxu1  ;;  %v2008_v52 = vpop.f32.mrb[13].mxu0 }
 0x114   : > { %v2016_v53 = vpop.f32.mrb[13].mxu1  ;;  %v751_v54 = vpop.f32.mrb[14].mxu0 }
 0x115   : > { %v755_v55 = vpack.c.bf16 %v751_v54, %v748_v50  ;;  %v812_v56 = vpop.f32.mrb[14].mxu1  ;;  %v2009_v57 = vpop.f32.mrb[15].mxu0 }
 0x116   : > { %v816_v58 = vpack.c.bf16 %v812_v56, %v809_v51  ;;  %v2017_v59 = vpop.f32.mrb[15].mxu1 }
 0x117   : > { %757 = vst.msk [vmem:[#allocation2 + $0x18] sm:$0xff] %vm392_vm2, %v755_v55 }
 0x118   : > { %818 = vst.msk [vmem:[#allocation3 + $0x18] sm:$0xff] %vm392_vm2, %v816_v58 }
 0x119 PF: > { %v2213_v60 = vld [vmem:[%s2764_s2] sm:$0xff]   ;;  %v2335_v61 = vmov 0.0   ;;  %v2214_v62 = vld [vmem:[%s2764_s2 + $0x8] sm:$0xff]   ;;  %vm2336_vm3 = vmmov 0   ;;  %vm884_vm4 = vcmask 64512   ;;  %vm837_vm5 = vcmask 261120  }
 0x11a   : > { %2018 = vmatprep.subr.bf16.mxu0 %v2335_v61  ;;  %2026 = vmatprep.subr.bf16.mxu1 %v2335_v61  ;;  %v819_v63 = vld [vmem:[%s2464_s29] sm:$0xff]  ;;  %v2215_v8 = vld [vmem:[%s2764_s2 + $0x10] sm:$0xff]   ;;  %v2216_v9 = vld [vmem:[%s2764_s2 + $0x18] sm:$0xff]   ;;  %vm931_vm6 = vcmask 130048   ;;  %vm1158_vm7 = vcmask 1043456   ;;  %s1889_s22 = sshll.u32 %s2319_s28, 1 }
 0x11b   : > { %2019 = vmatpush3.bf16.msra.mxu0 %v2213_v60  ;;  %2022 = vmatprep.mubr.msk.bf16.mxu0 %vm2336_vm3, %v2335_v61  ;;  %v881_v0 = vld [vmem:[#allocation2] sm:$0xff]  ;;  %v2579_v2 = vpack.c.bf16 %v819_v63, %v819_v63  ;;  %v1047_v27 = vld [vmem:[#allocation2 + $0x8] sm:$0xff]  ;;  %s1695_s23 = sadd.s32 %s2315_s27, %s1889_s22  ;;  %s1699_s12 = sshll.u32 %s308_s19, 4  ;;  %s2706_s12 = int_to_ptr.vmem [resolvable:$true] %s1699_s12 }
 0x11c   : > { %2020 = vmatprep.subr.bf16.mxu0 %v2335_v61  ;;  %v889_v1 = vsel %vm884_vm4, %v881_v0, 0  ;;  %2028 = vmatprep.mubr.msk.bf16.mxu1 %vm2336_vm3, %v2335_v61  ;;  %v882_v20 = vld [vmem:[#allocation3] sm:$0xff]  ;;  %v1055_v30 = vsel %vm884_vm4, %v1047_v27, 0  ;;  %v1049_v46 = vld [vmem:[#allocation3 + $0x8] sm:$0xff]  ;;  %v1308_v27 = vld [vmem:[#allocation3 + $0x10] sm:$0xff]  ;;  %s1890_s26 = sshll.u32 %s1695_s23, 7 }
 0x11d   : > { %2027 = vmatpush3.bf16.xpose.msra.mxu1 %v889_v1  ;;  %v1862_v47 = vld [vmem:[%s2767_s5 + $0x4] sm:$0xf]  ;;  %v988_v51 = vld [vmem:[%s2767_s5] sm:$0xf]  ;;  %v2218_v63 = vld [vmem:[%s2764_s2 + $0x28] sm:$0xff]   ;;  %s2704_s29 = scalar_lea.hbm %s2769_s7, %s1890_s26  ;;  %s2784_s27 = sand.u32 1, %s2307_s25  }
 0x11e   : > { %2038 = vmatprep.subr.bf16.mxu1 %v2335_v61  ;;  %v1160_v48 = vsel %vm1158_vm7, %v1862_v47, 0  ;;  %v1206_v54 = vsel %vm1158_vm7, %v988_v51, 0  ;;  %v2217_v57 = vld [vmem:[%s2764_s2 + $0x20] sm:$0xff]   ;;  %s1684_s28 = scalar_lea.sflag [#allocation5], %s2784_s27  ;;  %s2237_s10 = scalar_lea.vmem %s2706_s12, 128 }
 0x11f   : > { %2021 = vmatpush3.bf16.msra.mxu0 %v2214_v62  ;;  %p2238_p1 = scmp.ne.s32.totalorder %s2706_s12, %s2237_s10  ;;  %s2337_s13 = smov [#allocation4]  }
 0x120   : > { %2032 = vmatprep.subr.bf16.mxu0 %v2335_v61  ;;  %s2241_s16 = sshll.u32 %s2337_s13, 4  ;;  %s2242_s16 = int_to_ptr.vmem [resolvable:$false] %s2241_s16 }
 0x121   : > { %p2239_p2 = pnand %p2238_p1, %p2429_p3  ;;  %s2243_s17 = scalar_lea.vmem %s2242_s16, 256 }
 0x122   : > { %2023 = vmatmul.mubr.msk.bf16.vlgmr.msra.gmra.mrb[0].mxu0 %vm837_vm5, %v2579_v2  ;;  %p2244_p5 = scmp.lt.s32.totalorder %s2706_s12, %s2242_s16  ;;  %p2245_p6 = scmp.lt.s32.totalorder %s2243_s17, %s2237_s10 }
 0x123   : > { %2034 = vmatprep.mubr.msk.bf16.mxu0 %vm2336_vm3, %v2335_v61  ;;  %2033 = vmatpush3.bf16.msra.mxu0 %v882_v20  ;;  %p2240_p4 = pneg %p2239_p2 }
 0x124   : > { %2046 = vmatprep.subr.bf16.mxu0 %v2335_v61  ;;  %p2246_p7 = por %p2245_p6, %p2244_p5 }
 0x126   : > { %p2247_p9 = pnand %p2246_p7, %p2240_p4 }
 0x1f5   : > { %v875_v3 = vpop.f32.mrb[0].mxu0 }
 0x1f6   : > { %v883_v4 = vpack.c.bf16 %v875_v3, %v875_v3  ;;  %v2024_v5 = vpop.f32.mrb[1].mxu0 }
 0x1f7   : > { %v878_v6 = vpop.f32.mrb[2].mxu0  ;;  %v1306_v5 = vld [vmem:[#allocation2 + $0x10] sm:$0xff] }
 0x1f8   : > { %v2025_v7 = vpop.f32.mrb[3].mxu0  ;;  %2029 = vmatmul.mubr.msk.bf16.vlgmr.msra.gmra.mrb[0].mxu1 %vm884_vm4, %v883_v4  ;;  %v1314_v6 = vsel %vm884_vm4, %v1306_v5, 0 }
 0x1f9   : > { %2042 = vmatprep.mubr.msk.bf16.mxu1 %vm2336_vm3, %v2335_v61  ;;  %2039 = vmatpush3.bf16.msra.mxu1 %v2215_v8 }
 0x1fa   : > { %2040 = vmatprep.subr.bf16.mxu1 %v2335_v61 }
 0x1fd   : > { %2041 = vmatpush3.bf16.msra.mxu1 %v2216_v9 }
 0x1fe   : > { %2052 = vmatprep.subr.bf16.mxu1 %v2335_v61 }
 0x200   : > { %2043 = vmatmul.mubr.msk.bf16.vlgmr.msra.gmra.mrb[4].mxu1 %vm837_vm5, %v2579_v2 }
 0x201   : > { %2054 = vmatprep.mubr.msk.bf16.mxu1 %vm2336_vm3, %v2335_v61  ;;  %2053 = vmatpush3.bf16.msra.mxu1 %v1049_v46 }
 0x202   : > { %2064 = vmatprep.subr.bf16.mxu1 %v2335_v61 }
 0x2cb   : > { %v925_v10 = vpop.f32.mrb[0].mxu1 }
 0x2cc   : > { %v2030_v11 = vpop.f32.mrb[1].mxu1  ;;  %v932_v12 = vsel %vm931_vm6, %v925_v10, -inf }
 0x2cd   : > { %933 = vmax.xlane.f32.xlu0 %v932_v12  ;;  %v928_v13 = vpop.f32.mrb[2].mxu1 }
 0x2ce   : > { %v2031_v14 = vpop.f32.mrb[3].mxu1 }
 0x2d3   : > { %v1040_v21 = vpop.f32.mrb[4].mxu1 }
 0x2d4   : > { %v2044_v22 = vpop.f32.mrb[5].mxu1  ;;  %v1050_v31 = vpack.c.bf16 %v1040_v21, %v1040_v21 }
 0x2d5   : > { %v1043_v23 = vpop.f32.mrb[6].mxu1 }
 0x2d6   : > { %v2045_v24 = vpop.f32.mrb[7].mxu1 }
 0x35a   : > { %v934_v15 = vpop.xlane.xlu0 %933 }
 0x35b   : > { %v935_v16 = vsub.f32 %v925_v10, %v934_v15 }
 0x35d   : > { %v936_v17 = vmul.f32 1.442695, %v935_v16 }
 0x35f   : > { %2221 = vpow2.f32 %v936_v17 }
 0x369   : > { %v2222_v18 = vpop.eup %2221 }
 0x36a   : > { %v938_v19 = vsel %vm931_vm6, %v2222_v18, 0.0 }
 0x36b   : > { %939 = vadd.xlane.f32.xlu0 %v938_v19 }
 0x3f8   : > { %v940_v25 = vpop.xlane.xlu0 %939 }
 0x3f9   : > { %2223 = vrcp.f32 %v940_v25 }
 0x403   : > { %v2224_v26 = vpop.eup %2223 }
 0x404   : > { %v942_v28 = vmul.f32 %v2224_v26, %v2222_v18 }
 0x406   : > { %v943_v29 = vpack.c.bf16 %v942_v28, %v942_v28  ;;  %v1874_v28 = vld [vmem:[%s2767_s5 + $0x8] sm:$0xf] }
 0x408   : > { %2035 = vmatmul.mubr.msk.bf16.vlgmr.msra.gmra.mrb[4].mxu0 %vm931_vm6, %v943_v29  ;;  %v1418_v29 = vsel %vm1158_vm7, %v1874_v28, 0 }
 0x409   : > { %2047 = vmatpush3.bf16.xpose.msra.mxu0 %v1055_v30  ;;  %2048 = vmatprep.mubr.msk.bf16.mxu0 %vm2336_vm3, %v2335_v61 }
 0x40a   : > { %2058 = vmatprep.subr.bf16.mxu0 %v2335_v61 }
 0x410   : > { %2049 = vmatmul.mubr.msk.bf16.vlgmr.msra.gmra.mrb[8].mxu0 %vm884_vm4, %v1050_v31 }
 0x411   : > { %2060 = vmatprep.mubr.msk.bf16.mxu0 %vm2336_vm3, %v2335_v61  ;;  %2059 = vmatpush3.bf16.msra.mxu0 %v1160_v48 }
 0x412   : > { %2070 = vmatprep.subr.bf16.mxu0 %v2335_v61 }
 0x4db   : > { %v981_v32 = vpop.f32.mrb[4].mxu0 }
 0x4dc   : > { %v2036_v33 = vpop.f32.mrb[5].mxu0  ;;  %v987_v55 = vpack.c.bf16 %v981_v32, %v981_v32 }
 0x4dd   : > { %v984_v34 = vpop.f32.mrb[6].mxu0  ;;  %v2219_v33 = vld [vmem:[%s2764_s2 + $0x30] sm:$0xff]  }
 0x4de   : > { %v2037_v35 = vpop.f32.mrb[7].mxu0 }
 0x4df   : > { %v2220_v35 = vld [vmem:[%s2764_s2 + $0x38] sm:$0xff]  }
 0x4e3   : > { %v1091_v36 = vpop.f32.mrb[8].mxu0 }
 0x4e4   : > { %v2050_v37 = vpop.f32.mrb[9].mxu0  ;;  %v1097_v38 = vsel %vm931_vm6, %v1091_v36, -inf }
 0x4e5   : > { %1098 = vmax.xlane.f32.xlu1 %v1097_v38  ;;  %v1094_v39 = vpop.f32.mrb[10].mxu0 }
 0x4e6   : > { %v2051_v40 = vpop.f32.mrb[11].mxu0 }
 0x572   : > { %v1099_v41 = vpop.xlane.xlu1 %1098 }
 0x573   : > { %v1100_v42 = vsub.f32 %v1091_v36, %v1099_v41  ;;  %v1519_v36 = vld [vmem:[#allocation2 + $0x18] sm:$0xff] }
 0x574   : > { %v1527_v40 = vsel %vm884_vm4, %v1519_v36, 0 }
 0x575   : > { %v1101_v43 = vmul.f32 1.442695, %v1100_v42 }
 0x577   : > { %2225 = vpow2.f32 %v1101_v43 }
 0x581   : > { %v2226_v44 = vpop.eup %2225 }
 0x582   : > { %v1103_v45 = vsel %vm931_vm6, %v2226_v44, 0.0 }
 0x583   : > { %1104 = vadd.xlane.f32.xlu1 %v1103_v45 }
 0x610   : > { %v1105_v49 = vpop.xlane.xlu1 %1104 }
 0x611   : > { %2227 = vrcp.f32 %v1105_v49 }
 0x61b   : > { %v2228_v50 = vpop.eup %2227 }
 0x61c   : > { %v1107_v52 = vmul.f32 %v2228_v50, %v2226_v44 }
 0x61e   : > { %v1108_v53 = vpack.c.bf16 %v1107_v52, %v1107_v52 }
 0x620   : > { %2055 = vmatmul.mubr.msk.bf16.vlgmr.msra.gmra.mrb[8].mxu1 %vm931_vm6, %v1108_v53 }
 0x621   : > { %2065 = vmatpush3.bf16.msra.mxu1 %v1206_v54  ;;  %2066 = vmatprep.mubr.msk.bf16.mxu1 %vm2336_vm3, %v2335_v61 }
 0x622   : > { %2078 = vmatprep.subr.bf16.mxu1 %v2335_v61 }
 0x628   : > { %2067 = vmatmul.mubr.msk.bf16.vlgmr.msra.gmra.mrb[12].mxu1 %vm884_vm4, %v987_v55 }
 0x629   : > { %2080 = vmatprep.mubr.msk.bf16.mxu1 %vm2336_vm3, %v2335_v61 }
 0x62a   : > { %2079 = vmatpush3.bf16.xpose.msra.mxu1 %v1314_v6 }
 0x62b   : > { %2090 = vmatprep.subr.bf16.mxu1 %v2335_v61 }
 0x6f3   : > { %v1146_v56 = vpop.f32.mrb[8].mxu1 }
 0x6f4   : > { %v1152_v58 = vpack.c.bf16 %v1146_v56, %v1146_v56  ;;  %v2056_v59 = vpop.f32.mrb[9].mxu1 }
 0x6f5   : > { %v1149_v60 = vpop.f32.mrb[10].mxu1 }
 0x6f6   : > { %v2057_v62 = vpop.f32.mrb[11].mxu1  ;;  %2061 = vmatmul.mubr.msk.bf16.vlgmr.msra.gmra.mrb[12].mxu0 %vm884_vm4, %v1152_v58 }
 0x6f7   : > { %2071 = vmatpush3.bf16.msra.mxu0 %v2217_v57  ;;  %2074 = vmatprep.mubr.msk.bf16.mxu0 %vm2336_vm3, %v2335_v61  ;;  %v1521_v62 = vld [vmem:[#allocation3 + $0x18] sm:$0xff] }
 0x6f8   : > { %2072 = vmatprep.subr.bf16.mxu0 %v2335_v61 }
 0x6fb   : > { %2073 = vmatpush3.bf16.msra.mxu0 %v2218_v63  ;;  %v1242_v0 = vpop.f32.mrb[12].mxu1  ;;  %v1885_v63 = vld [vmem:[%s2767_s5 + $0xc] sm:$0xf] }
 0x6fc   : > { %v2068_v1 = vpop.f32.mrb[13].mxu1  ;;  %2084 = vmatprep.subr.bf16.mxu0 %v2335_v61 }
 0x6fd   : > { %v1245_v3 = vpop.f32.mrb[14].mxu1 }
 0x6fe   : > { %v2069_v4 = vpop.f32.mrb[15].mxu1  ;;  %2075 = vmatmul.mubr.msk.bf16.vlgmr.msra.gmra.mrb[16].mxu0 %vm837_vm5, %v2579_v2 }
 0x6ff   : > { %2086 = vmatprep.mubr.msk.bf16.mxu0 %vm2336_vm3, %v2335_v61  ;;  %2085 = vmatpush3.bf16.msra.mxu0 %v1308_v27 }
 0x700   : > { %2096 = vmatprep.subr.bf16.mxu0 %v2335_v61 }
 0x7c9   : > { %v1196_v7 = vpop.f32.mrb[12].mxu0 }
 0x7ca   : > { %v2649_v8 = vadd.f32 %v1242_v0, %v1196_v7  ;;  %v2062_v9 = vpop.f32.mrb[13].mxu0  ;;  %v1631_v0 = vsel %vm1158_vm7, %v1885_v63, 0 }
 0x7cb   : > { %v1199_v10 = vpop.f32.mrb[14].mxu0 }
 0x7cc   : > { %v2063_v11 = vpop.f32.mrb[15].mxu0 }
 0x7d1   : > { %v1299_v12 = vpop.f32.mrb[16].mxu0 }
 0x7d2   : > { %v1309_v13 = vpack.c.bf16 %v1299_v12, %v1299_v12  ;;  %v2076_v14 = vpop.f32.mrb[17].mxu0  ;;  %v1887_v12 = vld [vmem:[%s2768_s6] ss:$0 sm:$0xff] }
 0x7d3   : > { %v1302_v15 = vpop.f32.mrb[18].mxu0 }
 0x7d4   : > { %v2077_v16 = vpop.f32.mrb[19].mxu0  ;;  %2081 = vmatmul.mubr.msk.bf16.vlgmr.msra.gmra.mrb[16].mxu1 %vm884_vm4, %v1309_v13 }
 0x7d5   : > { %2092 = vmatprep.mubr.msk.bf16.mxu1 %vm2336_vm3, %v2335_v61  ;;  %2091 = vmatpush3.bf16.msra.mxu1 %v1418_v29 }
 0x7d6   : > { %2104 = vmatprep.subr.bf16.mxu1 %v2335_v61 }
 0x8a7   : > { %v1350_v17 = vpop.f32.mrb[16].mxu1 }
 0x8a8   : > { %v2082_v18 = vpop.f32.mrb[17].mxu1  ;;  %v1356_v19 = vsel %vm931_vm6, %v1350_v17, -inf }
 0x8a9   : > { %1357 = vmax.xlane.f32.xlu0 %v1356_v19  ;;  %v1353_v20 = vpop.f32.mrb[18].mxu1 }
 0x8aa   : > { %v2083_v21 = vpop.f32.mrb[19].mxu1 }
 0x936   : > { %v1358_v22 = vpop.xlane.xlu0 %1357 }
 0x937   : > { %v1359_v23 = vsub.f32 %v1350_v17, %v1358_v22 }
 0x939   : > { %v1360_v24 = vmul.f32 1.442695, %v1359_v23 }
 0x93b   : > { %2229 = vpow2.f32 %v1360_v24 }
 0x945   : > { %v2230_v25 = vpop.eup %2229 }
 0x946   : > { %v1362_v26 = vsel %vm931_vm6, %v2230_v25, 0.0 }
 0x947   : > { %1363 = vadd.xlane.f32.xlu1 %v1362_v26 }
 0x9d4   : > { %v1364_v30 = vpop.xlane.xlu1 %1363 }
 0x9d5   : > { %2231 = vrcp.f32 %v1364_v30 }
 0x9df   : > { %v2232_v31 = vpop.eup %2231 }
 0x9e0   : > { %v1366_v32 = vmul.f32 %v2232_v31, %v2230_v25 }
 0x9e2   : > { %v1367_v34 = vpack.c.bf16 %v1366_v32, %v1366_v32 }
 0x9e4   : > { %2087 = vmatmul.mubr.msk.bf16.vlgmr.msra.gmra.mrb[20].mxu0 %vm931_vm6, %v1367_v34 }
 0x9e5   : > { %2097 = vmatpush3.bf16.msra.mxu0 %v2219_v33  ;;  %2100 = vmatprep.mubr.msk.bf16.mxu0 %vm2336_vm3, %v2335_v61 }
 0x9e6   : > { %2098 = vmatprep.subr.bf16.mxu0 %v2335_v61 }
 0x9e9   : > { %2099 = vmatpush3.bf16.msra.mxu0 %v2220_v35 }
 0x9ea   : > { %2110 = vmatprep.subr.bf16.mxu0 %v2335_v61 }
 0x9ec   : > { %2101 = vmatmul.mubr.msk.bf16.vlgmr.msra.gmra.mrb[24].mxu0 %vm837_vm5, %v2579_v2 }
 0x9ed   : > { %2112 = vmatprep.mubr.msk.bf16.mxu0 %vm2336_vm3, %v2335_v61  ;;  %2111 = vmatpush3.bf16.msra.mxu0 %v1521_v62 }
 0xab7   : > { %v1405_v37 = vpop.f32.mrb[20].mxu0 }
 0xab8   : > { %v1411_v38 = vpack.c.bf16 %v1405_v37, %v1405_v37  ;;  %v2088_v39 = vpop.f32.mrb[21].mxu0 }
 0xab9   : > { %v1408_v41 = vpop.f32.mrb[22].mxu0 }
 0xaba   : > { %v2089_v42 = vpop.f32.mrb[23].mxu0  ;;  %2093 = vmatmul.mubr.msk.bf16.vlgmr.msra.gmra.mrb[20].mxu1 %vm884_vm4, %v1411_v38 }
 0xabb   : > { %2105 = vmatpush3.bf16.xpose.msra.mxu1 %v1527_v40  ;;  %2106 = vmatprep.mubr.msk.bf16.mxu1 %vm2336_vm3, %v2335_v61 }
 0xabc   : > { %2116 = vmatprep.subr.bf16.mxu1 %v2335_v61 }
 0xabf   : > { %v1512_v2 = vpop.f32.mrb[24].mxu0 }
 0xac0   : > { %v1522_v43 = vpack.c.bf16 %v1512_v2, %v1512_v2  ;;  %v2102_v44 = vpop.f32.mrb[25].mxu0 }
 0xac1   : > { %v1515_v45 = vpop.f32.mrb[26].mxu0 }
 0xac2   : > { %v2103_v46 = vpop.f32.mrb[27].mxu0  ;;  %2107 = vmatmul.mubr.msk.bf16.vlgmr.msra.gmra.mrb[24].mxu1 %vm884_vm4, %v1522_v43 }
 0xac3   : > { %2118 = vmatprep.mubr.msk.bf16.mxu1 %vm2336_vm3, %v2335_v61  ;;  %2117 = vmatpush3.bf16.msra.mxu1 %v1631_v0 }
 0xb8d   : > { %v1454_v47 = vpop.f32.mrb[20].mxu1 }
 0xb8e   : > { %v1460_v48 = vadd.f32 %v1454_v47, %v2649_v8  ;;  %v2094_v49 = vpop.f32.mrb[21].mxu1 }
 0xb8f   : > { %v1457_v50 = vpop.f32.mrb[22].mxu1 }
 0xb90   : > { %v2095_v51 = vpop.f32.mrb[23].mxu1 }
 0xb95   : > { %v1563_v52 = vpop.f32.mrb[24].mxu1 }
 0xb96   : > { %v2108_v53 = vpop.f32.mrb[25].mxu1  ;;  %v1569_v54 = vsel %vm931_vm6, %v1563_v52, -inf }
 0xb97   : > { %1570 = vmax.xlane.f32.xlu0 %v1569_v54  ;;  %v1566_v55 = vpop.f32.mrb[26].mxu1 }
 0xb98   : > { %v2109_v56 = vpop.f32.mrb[27].mxu1 }
 0xc24   : > { %v1571_v57 = vpop.xlane.xlu0 %1570 }
 0xc25   : > { %v1572_v58 = vsub.f32 %v1563_v52, %v1571_v57 }
 0xc27   : > { %v1573_v59 = vmul.f32 1.442695, %v1572_v58 }
 0xc29   : > { %2233 = vpow2.f32 %v1573_v59 }
 0xc33   : > { %v2234_v60 = vpop.eup %2233 }
 0xc34   : > { %v1575_v61 = vsel %vm931_vm6, %v2234_v60, 0.0 }
 0xc35   : > { %1576 = vadd.xlane.f32.xlu1 %v1575_v61 }
 0xcc2   : > { %v1577_v1 = vpop.xlane.xlu1 %1576 }
 0xcc3   : > { %2235 = vrcp.f32 %v1577_v1 }
 0xccd   : > { %v2236_v3 = vpop.eup %2235 }
 0xcce   : > { %v1579_v4 = vmul.f32 %v2236_v3, %v2234_v60 }
 0xcd0   : > { %v1580_v5 = vpack.c.bf16 %v1579_v4, %v1579_v4 }
 0xcd2   : > { %2113 = vmatmul.mubr.msk.bf16.vlgmr.msra.gmra.mrb[28].mxu0 %vm931_vm6, %v1580_v5 }
 0xda5   : > { %v1618_v6 = vpop.f32.mrb[28].mxu0 }
 0xda6   : > { %v1624_v7 = vpack.c.bf16 %v1618_v6, %v1618_v6  ;;  %v2114_v8 = vpop.f32.mrb[29].mxu0 }
 0xda7   : > { %v1621_v9 = vpop.f32.mrb[30].mxu0 }
 0xda8   : > { %v2115_v10 = vpop.f32.mrb[31].mxu0  ;;  %2119 = vmatmul.mubr.msk.bf16.vlgmr.msra.gmra.mrb[28].mxu1 %vm884_vm4, %v1624_v7 }
 0xe7b   : > { %v1667_v11 = vpop.f32.mrb[28].mxu1 }
 0xe7c   : > { %v1673_v13 = vadd.f32 %v1667_v11, %v1460_v48  ;;  %v2120_v14 = vpop.f32.mrb[29].mxu1 }
 0xe7d   : > { %v1670_v15 = vpop.f32.mrb[30].mxu1 }
 0xe7e   : > { %v1681_v16 = vadd.f32 %v1887_v12, %v1673_v13  ;;  %v2121_v17 = vpop.f32.mrb[31].mxu1 }
 0xe80   : > { %1682 = vst.msk [vmem:[%s308_s19] sm:$0xff] %vm837_vm5, %v1681_v16 }
 0xe81   : > { %2250 = shalt.err (!%p2247_p9)
}
 0xe82   : > { %s2251_s19 = scalar_lea.hbm %s2704_s29, 128  ;;  %s2255_s22 = scalar_lea.hbm %s2769_s7, 512 }
 0xe83   : > { %p2252_p10 = scmp.ne.s32.totalorder %s2704_s29, %s2251_s19  ;;  %p2256_p13 = scmp.lt.u32.totalorder %s2704_s29, %s2769_s7 }
 0xe84   : > { %p2257_p0 = scmp.lt.u32.totalorder %s2255_s22, %s2251_s19  ;;  %p2259_p2 = scmp.lt.u32.totalorder %s2251_s19, %s2704_s29 }
 0xe85   : > { %p2253_p11 = pnand %p2252_p10, %p2429_p3 }
 0xe86   : > { %p2258_p1 = por %p2257_p0, %p2256_p13 }
 0xe87   : > { %p2254_p12 = pneg %p2253_p11 }
 0xe88   : > { %p2260_p4 = por %p2259_p2, %p2258_p1 }
 0xe8a   : > { %p2261_p5 = pnand %p2260_p4, %p2254_p12 }
 0xe8c   : > { %2264 = shalt.err (!%p2261_p5)
}
 0xe8d   : > { %2122 = dma.vmem_to_hbm [thread:$0]  (%p2429_p3), %s2706_s12, 128, %s2704_s29, %s1684_s28  }
 0xe8e PF: > { %p2128_p6 = scmp.ge.s32.totalorder %s2331_s8, 2  ;;  %s1711_s11 = sand.u32 1, %s2303_s24  }
 0xe8f   : > { %s1712_s26 = scalar_lea.sflag [#allocation5], %s1711_s11 }
 0xe90   : > { %p2125_p7 = pnand %p2128_p6, %p2438_p8 }
 0xe92   : > { %2298 = dma.done.wait (!%p2125_p7), %s1712_s26, 128  }
 0xe93   : > { %2300 = vsyncadd (!%p2125_p7), %s1712_s26, 4294967168  ;;  %s20_s8 = sadd.s32 1, %s2331_s8   ;;  %s2785_s20 = sld [smem:[#allocation7_spill]] }
 0xe94   : > { %p17_p9 = scmp.ge.s32.totalorder %s20_s8, 6   ;;  %s2786_s26 = sld [smem:[#allocation12_spill]] }
 0xe95   : > { %s2787_s27 = sld [smem:[#allocation8_spill]]  ;;  %s2788_s28 = sld [smem:[#allocation9_spill]] }
 0xe96   : > { %s2789_s29 = sld [smem:[#allocation10_spill]]  ;;  %s2790_s30 = sld [smem:[#allocation11_spill]] }
 0xe97   : > { %s2791_s24 = smov %s2307_s25  ;;  %19 = sbr.rel (!%p17_p9) target bundleno = 5 (0x5), region = 114 }
 0xe99   : > { %s2792_s25 = smov %s2785_s20 }
 0xe9e   :  { %1717 = vsyncpa [#allocation5], 1 }
 0xe9f   :  { %1719 = vsyncpa [#allocation5 + $0x1], 1 }

// kernel: tpu_custom_call.1
= control target key start
LH: loop header
LB: loop body
LE: loop exit
PB: predicated region body
PF: predicated region fallthrough
CT: control target
= control target key end

     0   :  { %12 = vsyncpa [#allocation5], 0  ;;  %s2762_s0 = inlined_call_operand.vmem [shape: f32[2,16,32], index: 0, kind: input, shape index: {}]   ;;  %s2763_s1 = inlined_call_operand.vmem [shape: f32[2,16,32], index: 1, kind: input, shape index: {}]   ;;  %s2764_s2 = inlined_call_operand.vmem [shape: bf16[4,32,8], index: 2, kind: input, shape index: {}]   ;;  %s2765_s3 = inlined_call_operand.vmem [shape: bf16[4,32,8], index: 3, kind: input, shape index: {}]   ;;  %s2766_s4 = inlined_call_operand.vmem [shape: bf16[4,32,8], index: 4, kind: input, shape index: {}]   ;;  %s2767_s5 = inlined_call_operand.vmem [shape: bf16[4,8,32], index: 5, kind: input, shape index: {}]   ;;  %s2768_s6 = inlined_call_operand.vmem [shape: f32[1,32], index: 6, kind: input, shape index: {}]   ;;  %s2769_s7 = inlined_call_operand.hbm [shape: f32[2,16,32], index: 7, kind: output, shape index: {}]  }
   0x1   :  { %14 = vsyncpa [#allocation5 + $0x1], 0  ;;  %s2378_s24 = smov 0   ;;  %s2380_s25 = smov 0  }
   0x2   :  { %s2382_s26 = smov 0   ;;  %s2384_s27 = smov 0  }
   0x3   :  { %s2386_s28 = smov 0   ;;  %s2388_s29 = smov 0  }
   0x4   :  { %s2390_s30 = smov 0   ;;  %s2392_s8 = smov 0  }
   0x5 LB: > { %2776 = sst [smem:[#allocation7_spill]] %s2311_s26  ;;  %s1789_s9 = sadd.s32 4294967295, %s2331_s8   ;;  %s2331_s8 = sphi %s2392_s8, %s20_s8   ;;  %s2327_s30 = sphi %s2390_s30, %s2790_s30   ;;  %s2323_s29 = sphi %s2388_s29, %s2789_s29   ;;  %s2319_s28 = sphi %s2386_s28, %s2788_s28   ;;  %s2315_s27 = sphi %s2384_s27, %s2787_s27   ;;  %s2311_s26 = sphi %s2382_s26, %s2786_s26   ;;  %s2307_s25 = sphi %s2380_s25, %s2792_s25   ;;  %s2303_s24 = sphi %s2378_s24, %s2791_s24  }
   0x6   : > { %2777 = sst [smem:[#allocation8_spill]] %s2323_s29  ;;  %s1790_s10 = sadd.s32 4294967294, %s2331_s8  }
   0x7   : > { %2778 = sst [smem:[#allocation9_spill]] %s2327_s30  ;;  %s29_s11 = sadd.s32 1, %s2323_s29 }
   0x8   : > { %p30_p0 = scmp.ge.s32.totalorder %s29_s11, 2  ;;  %s32_s12 = sadd.s32 1, %s2327_s30 }
   0x9   : > { %p210_p1 = scmp.ne.s32.totalorder %s2311_s26, %s2307_s25  ;;  %p211_p2 = scmp.eq.s32.totalorder %s1789_s9, 3 }
   0xa   : > { %s2794_s11 = smov (%p30_p0, %s29_s11), 0  ;;  %s2796_s12 = smov (!%p30_p0, %s32_s12), %s2327_s30 }
   0xb   : > { %2779 = sst [smem:[#allocation10_spill]] %s2794_s11  ;;  %s196_s13 = ssub.s32 %s2323_s29, %s2794_s11 }
   0xc   : > { %p2429_p3 = por %p211_p2, %p210_p1  ;;  %p34_p4 = scmp.ge.s32.totalorder %s2796_s12, 2 }
   0xd   : > { %p216_p5 = scmp.ne.s32.totalorder %s2307_s25, %s2303_s24  ;;  %p217_p6 = scmp.eq.s32.totalorder %s1790_s10, 3 }
   0xe   : > { %p1793_p7 = scmp.ge.s32.totalorder %s2331_s8, 1  ;;  %s2798_s12 = smov (%p34_p4, %s2796_s12), 0 }
   0xf   : > { %2781 = sst [smem:[#allocation11_spill]] %s2798_s12  ;;  %p2438_p8 = por %p217_p6, %p216_p5 }
  0x10   : > { %p269_p9 = scmp.lt.s32.totalorder %s2331_s8, 5  ;;  %s195_s16 = ssub.s32 %s2327_s30, %s2798_s12 }
  0x11   : > { %s200_s17 = sadd.s32 1, %s2311_s26  ;;  %s197_s18 = sor.u32 %s196_s13, %s195_s16 }
  0x12   : > { %p270_p10 = pnand %p1793_p7, %p269_p9  ;;  %p198_p11 = scmp.eq.s32.totalorder %s197_s18, 0 }
  0x13   : > { %s2774_s20 = sand.u32 (!%p270_p10), 1, %s2307_s25   ;;  %p309_p12 = scmp.lt.s32.totalorder (!%p270_p10), %s2319_s28, 1 }
  0x14   : > { %s2447_s19 = scalar_select %p198_p11, %s2311_s26, %s200_s17  }
  0x15   : > { %273 = sbr.rel (%p270_p10) target bundleno = 3726 (0xe8e), region = 48  ;;  %s2453_s21 = sshll.u32 (!%p270_p10), %s2774_s20, 3 }
  0x16   : > { %2783 = sst [smem:[#allocation12_spill]] %s2447_s19  ;;  %p311_p13 = scmp.lt.s32.totalorder (!%p270_p10), %s2315_s27, 1 }
  0x17   : > { %s308_s19 = scalar_lea.vmem (!%p270_p10), [#allocation4], %s2453_s21  ;;  %p1799_p0 = scmp.ne.s32.totalorder (!%p270_p10), %s2315_s27, 0 }
  0x1c   : > { %s310_s22 = scalar_select %p309_p12, %s2319_s28, 1 }
  0x1d   : > { %s312_s23 = scalar_select %p311_p13, %s2315_s27, 1 }
  0x1e   : > { %s1795_s9 = sshll.u32 %s310_s22, 1  ;;  %s1893_s10 = sshll.u32 %s310_s22, 4  ;;  %v2197_v0 = vld [vmem:[%s2765_s3] sm:$0xff] (!%p1799_p0)   ;;  %v2333_v1 = vmov (!%p1799_p0), 0.0   ;;  %v2199_v3 = vld [vmem:[%s2765_s3 + $0x8] sm:$0xff] (!%p1799_p0)   ;;  %vm2334_vm0 = vmmov (!%p1799_p0), 0  }
  0x1f   : > { %s314_s13 = sadd.s32 %s1795_s9, %s312_s23  ;;  %s321_s18 = scalar_lea.vmem %s2763_s1, %s1893_s10  ;;  %1954 = vmatprep.subr.bf16.mxu0 (!%p1799_p0), %v2333_v1  ;;  %1962 = vmatprep.subr.bf16.mxu1 (!%p1799_p0), %v2333_v1  ;;  %v2198_v2 = vld [vmem:[%s2766_s4] sm:$0xff] (!%p1799_p0)   ;;  %v2200_v4 = vld [vmem:[%s2766_s4 + $0x8] sm:$0xff] (!%p1799_p0)   ;;  %vm346_vm1 = vcmask (!%p1799_p0), 261120   ;;  %v2201_v8 = vld [vmem:[%s2765_s3 + $0x10] sm:$0xff] (!%p1799_p0)   ;;  %vm392_vm2 = vcmask (!%p1799_p0), 64512  }
  0x20   : > { %s1796_s12 = sshll.u32 %s314_s13, 3  ;;  %326 = sbr.rel (%p1799_p0) target bundleno = 281 (0x119), region = 52  ;;  %1955 = vmatpush3.bf16.msra.mxu0 (!%p1799_p0), %v2197_v0  ;;  %1958 = vmatprep.mubr.msk.bf16.mxu0 (!%p1799_p0), %vm2334_vm0, %v2333_v1  ;;  %v327_v5 = vld [vmem:[%s321_s18] sm:$0xff] (!%p1799_p0)  ;;  %v328_v6 = vld [vmem:[%s321_s18 + $0x8] sm:$0xff] (!%p1799_p0)  ;;  %v2202_v9 = vld [vmem:[%s2766_s4 + $0x10] sm:$0xff] (!%p1799_p0)  }
  0x21   : > { %s2464_s29 = scalar_lea.vmem %s2762_s0, %s1796_s12  ;;  %1963 = vmatpush3.bf16.msra.mxu1 (!%p1799_p0), %v2198_v2  ;;  %1956 = vmatprep.subr.bf16.mxu0 (!%p1799_p0), %v2333_v1  ;;  %v329_v7 = vpack.c.bf16 (!%p1799_p0), %v328_v6, %v327_v5  ;;  %v2203_v10 = vld [vmem:[%s2765_s3 + $0x18] sm:$0xff] (!%p1799_p0)   ;;  %v2205_v12 = vld [vmem:[%s2765_s3 + $0x20] sm:$0xff] (!%p1799_p0)   ;;  %v2207_v14 = vld [vmem:[%s2765_s3 + $0x28] sm:$0xff] (!%p1799_p0)  }
  0x22   : > { %1964 = vmatprep.subr.bf16.mxu1 (!%p1799_p0), %v2333_v1  ;;  %1966 = vmatprep.mubr.msk.bf16.mxu1 (!%p1799_p0), %vm2334_vm0, %v2333_v1  ;;  %v2204_v11 = vld [vmem:[%s2766_s4 + $0x18] sm:$0xff] (!%p1799_p0)   ;;  %v2206_v13 = vld [vmem:[%s2766_s4 + $0x20] sm:$0xff] (!%p1799_p0)   ;;  %v2208_v15 = vld [vmem:[%s2766_s4 + $0x28] sm:$0xff] (!%p1799_p0)  }
  0x23   : > { %v2209_v16 = vld [vmem:[%s2765_s3 + $0x30] sm:$0xff] (!%p1799_p0)   ;;  %v2211_v18 = vld [vmem:[%s2765_s3 + $0x38] sm:$0xff] (!%p1799_p0)  }
  0x24   : > { %1957 = vmatpush3.bf16.msra.mxu0 (!%p1799_p0), %v2199_v3  ;;  %v2210_v17 = vld [vmem:[%s2766_s4 + $0x30] sm:$0xff] (!%p1799_p0)   ;;  %v2212_v19 = vld [vmem:[%s2766_s4 + $0x38] sm:$0xff] (!%p1799_p0)  }
  0x25   : > { %1965 = vmatpush3.bf16.msra.mxu1 (!%p1799_p0), %v2200_v4  ;;  %1970 = vmatprep.subr.bf16.mxu0 (!%p1799_p0), %v2333_v1 }
  0x26   : > { %1978 = vmatprep.subr.bf16.mxu1 (!%p1799_p0), %v2333_v1 }
  0x27   : > { %1959 = vmatmul.mubr.msk.bf16.vlgmr.msra.gmra.mrb[0].mxu0 %vm346_vm1, %v329_v7 }
  0x28   : > { %1967 = vmatmul.mubr.msk.bf16.vlgmr.msra.gmra.mrb[0].mxu1 %vm346_vm1, %v329_v7  ;;  %1971 = vmatpush3.bf16.msra.mxu0 %v2201_v8 }
  0x29   : > { %1979 = vmatpush3.bf16.msra.mxu1 %v2202_v9  ;;  %1972 = vmatprep.subr.bf16.mxu0 %v2333_v1 }
  0x2a   : > { %1980 = vmatprep.subr.bf16.mxu1 %v2333_v1  ;;  %1974 = vmatprep.mubr.msk.bf16.mxu0 %vm2334_vm0, %v2333_v1 }
  0x2b   : > { %1982 = vmatprep.mubr.msk.bf16.mxu1 %vm2334_vm0, %v2333_v1 }
  0x2c   : > { %1973 = vmatpush3.bf16.msra.mxu0 %v2203_v10 }
  0x2d   : > { %1981 = vmatpush3.bf16.msra.mxu1 %v2204_v11  ;;  %1986 = vmatprep.subr.bf16.mxu0 %v2333_v1 }
  0x2e   : > { %1994 = vmatprep.subr.bf16.mxu1 %v2333_v1 }
  0x2f   : > { %1975 = vmatmul.mubr.msk.bf16.vlgmr.msra.gmra.mrb[4].mxu0 %vm346_vm1, %v329_v7 }
  0x30   : > { %1983 = vmatmul.mubr.msk.bf16.vlgmr.msra.gmra.mrb[4].mxu1 %vm346_vm1, %v329_v7  ;;  %1987 = vmatpush3.bf16.msra.mxu0 %v2205_v12 }
  0x31   : > { %1995 = vmatpush3.bf16.msra.mxu1 %v2206_v13  ;;  %1988 = vmatprep.subr.bf16.mxu0 %v2333_v1 }
  0x32   : > { %1996 = vmatprep.subr.bf16.mxu1 %v2333_v1  ;;  %1990 = vmatprep.mubr.msk.bf16.mxu0 %vm2334_vm0, %v2333_v1 }
  0x33   : > { %1998 = vmatprep.mubr.msk.bf16.mxu1 %vm2334_vm0, %v2333_v1 }
  0x34   : > { %1989 = vmatpush3.bf16.msra.mxu0 %v2207_v14 }
  0x35   : > { %1997 = vmatpush3.bf16.msra.mxu1 %v2208_v15  ;;  %2002 = vmatprep.subr.bf16.mxu0 %v2333_v1 }
  0x36   : > { %2010 = vmatprep.subr.bf16.mxu1 %v2333_v1 }
  0x37   : > { %1991 = vmatmul.mubr.msk.bf16.vlgmr.msra.gmra.mrb[8].mxu0 %vm346_vm1, %v329_v7 }
  0x38   : > { %1999 = vmatmul.mubr.msk.bf16.vlgmr.msra.gmra.mrb[8].mxu1 %vm346_vm1, %v329_v7  ;;  %2003 = vmatpush3.bf16.msra.mxu0 %v2209_v16 }
  0x39   : > { %2011 = vmatpush3.bf16.msra.mxu1 %v2210_v17  ;;  %2004 = vmatprep.subr.bf16.mxu0 %v2333_v1 }
  0x3a   : > { %2012 = vmatprep.subr.bf16.mxu1 %v2333_v1  ;;  %2006 = vmatprep.mubr.msk.bf16.mxu0 %vm2334_vm0, %v2333_v1 }
  0x3b   : > { %2014 = vmatprep.mubr.msk.bf16.mxu1 %vm2334_vm0, %v2333_v1 }
  0x3c   : > { %2005 = vmatpush3.bf16.msra.mxu0 %v2211_v18 }
  0x3d   : > { %2013 = vmatpush3.bf16.msra.mxu1 %v2212_v19 }
  0x3f   : > { %2007 = vmatmul.mubr.msk.bf16.vlgmr.msra.gmra.mrb[12].mxu0 %vm346_vm1, %v329_v7 }
  0x40   : > { %2015 = vmatmul.mubr.msk.bf16.vlgmr.msra.gmra.mrb[12].mxu1 %vm346_vm1, %v329_v7 }
  0xfa   : > { %v384_v20 = vpop.f32.mrb[0].mxu0 }
  0xfb   : > { %v444_v21 = vpop.f32.mrb[0].mxu1  ;;  %v1960_v22 = vpop.f32.mrb[1].mxu0 }
  0xfc   : > { %v1968_v23 = vpop.f32.mrb[1].mxu1  ;;  %v387_v24 = vpop.f32.mrb[2].mxu0 }
  0xfd   : > { %v391_v25 = vpack.c.bf16 %v387_v24, %v384_v20  ;;  %v447_v26 = vpop.f32.mrb[2].mxu1  ;;  %v1961_v27 = vpop.f32.mrb[3].mxu0 }
  0xfe   : > { %v451_v28 = vpack.c.bf16 %v447_v26, %v444_v21  ;;  %v1969_v29 = vpop.f32.mrb[3].mxu1 }
  0xff   : > { %393 = vst.msk [vmem:[#allocation2] sm:$0xff] %vm392_vm2, %v391_v25 }
 0x100   : > { %452 = vst.msk [vmem:[#allocation3] sm:$0xff] %vm392_vm2, %v451_v28 }
 0x102   : > { %v504_v30 = vpop.f32.mrb[4].mxu0 }
 0x103   : > { %v565_v31 = vpop.f32.mrb[4].mxu1  ;;  %v1976_v32 = vpop.f32.mrb[5].mxu0 }
 0x104   : > { %v1984_v33 = vpop.f32.mrb[5].mxu1  ;;  %v507_v34 = vpop.f32.mrb[6].mxu0 }
 0x105   : > { %v511_v35 = vpack.c.bf16 %v507_v34, %v504_v30  ;;  %v568_v36 = vpop.f32.mrb[6].mxu1  ;;  %v1977_v37 = vpop.f32.mrb[7].mxu0 }
 0x106   : > { %v572_v38 = vpack.c.bf16 %v568_v36, %v565_v31  ;;  %v1985_v39 = vpop.f32.mrb[7].mxu1 }
 0x107   : > { %513 = vst.msk [vmem:[#allocation2 + $0x8] sm:$0xff] %vm392_vm2, %v511_v35 }
 0x108   : > { %574 = vst.msk [vmem:[#allocation3 + $0x8] sm:$0xff] %vm392_vm2, %v572_v38 }
 0x10a   : > { %v626_v40 = vpop.f32.mrb[8].mxu0 }
 0x10b   : > { %v687_v41 = vpop.f32.mrb[8].mxu1  ;;  %v1992_v42 = vpop.f32.mrb[9].mxu0 }
 0x10c   : > { %v2000_v43 = vpop.f32.mrb[9].mxu1  ;;  %v629_v44 = vpop.f32.mrb[10].mxu0 }
 0x10d   : > { %v633_v45 = vpack.c.bf16 %v629_v44, %v626_v40  ;;  %v690_v46 = vpop.f32.mrb[10].mxu1  ;;  %v1993_v47 = vpop.f32.mrb[11].mxu0 }
 0x10e   : > { %v694_v48 = vpack.c.bf16 %v690_v46, %v687_v41  ;;  %v2001_v49 = vpop.f32.mrb[11].mxu1 }
 0x10f   : > { %635 = vst.msk [vmem:[#allocation2 + $0x10] sm:$0xff] %vm392_vm2, %v633_v45 }
 0x110   : > { %696 = vst.msk [vmem:[#allocation3 + $0x10] sm:$0xff] %vm392_vm2, %v694_v48 }
 0x112   : > { %v748_v50 = vpop.f32.mrb[12].mxu0 }
 0x113   : > { %v809_v51 = vpop.f32.mrb[12].mxu1  ;;  %v2008_v52 = vpop.f32.mrb[13].mxu0 }
 0x114   : > { %v2016_v53 = vpop.f32.mrb[13].mxu1  ;;  %v751_v54 = vpop.f32.mrb[14].mxu0 }
 0x115   : > { %v755_v55 = vpack.c.bf16 %v751_v54, %v748_v50  ;;  %v812_v56 = vpop.f32.mrb[14].mxu1  ;;  %v2009_v57 = vpop.f32.mrb[15].mxu0 }
 0x116   : > { %v816_v58 = vpack.c.bf16 %v812_v56, %v809_v51  ;;  %v2017_v59 = vpop.f32.mrb[15].mxu1 }
 0x117   : > { %757 = vst.msk [vmem:[#allocation2 + $0x18] sm:$0xff] %vm392_vm2, %v755_v55 }
 0x118   : > { %818 = vst.msk [vmem:[#allocation3 + $0x18] sm:$0xff] %vm392_vm2, %v816_v58 }
 0x119 PF: > { %v2213_v60 = vld [vmem:[%s2764_s2] sm:$0xff]   ;;  %v2335_v61 = vmov 0.0   ;;  %v2214_v62 = vld [vmem:[%s2764_s2 + $0x8] sm:$0xff]   ;;  %vm2336_vm3 = vmmov 0   ;;  %vm884_vm4 = vcmask 64512   ;;  %vm837_vm5 = vcmask 261120  }
 0x11a   : > { %2018 = vmatprep.subr.bf16.mxu0 %v2335_v61  ;;  %2026 = vmatprep.subr.bf16.mxu1 %v2335_v61  ;;  %v819_v63 = vld [vmem:[%s2464_s29] sm:$0xff]  ;;  %v2215_v8 = vld [vmem:[%s2764_s2 + $0x10] sm:$0xff]   ;;  %v2216_v9 = vld [vmem:[%s2764_s2 + $0x18] sm:$0xff]   ;;  %vm931_vm6 = vcmask 130048   ;;  %vm1158_vm7 = vcmask 1043456   ;;  %s1889_s22 = sshll.u32 %s2319_s28, 1 }
 0x11b   : > { %2019 = vmatpush3.bf16.msra.mxu0 %v2213_v60  ;;  %2022 = vmatprep.mubr.msk.bf16.mxu0 %vm2336_vm3, %v2335_v61  ;;  %v881_v0 = vld [vmem:[#allocation2] sm:$0xff]  ;;  %v2579_v2 = vpack.c.bf16 %v819_v63, %v819_v63  ;;  %v1047_v27 = vld [vmem:[#allocation2 + $0x8] sm:$0xff]  ;;  %s1695_s23 = sadd.s32 %s2315_s27, %s1889_s22  ;;  %s1699_s12 = sshll.u32 %s308_s19, 4  ;;  %s2706_s12 = int_to_ptr.vmem [resolvable:$true] %s1699_s12 }
 0x11c   : > { %2020 = vmatprep.subr.bf16.mxu0 %v2335_v61  ;;  %v889_v1 = vsel %vm884_vm4, %v881_v0, 0  ;;  %2028 = vmatprep.mubr.msk.bf16.mxu1 %vm2336_vm3, %v2335_v61  ;;  %v882_v20 = vld [vmem:[#allocation3] sm:$0xff]  ;;  %v1055_v30 = vsel %vm884_vm4, %v1047_v27, 0  ;;  %v1049_v46 = vld [vmem:[#allocation3 + $0x8] sm:$0xff]  ;;  %v1308_v27 = vld [vmem:[#allocation3 + $0x10] sm:$0xff]  ;;  %s1890_s26 = sshll.u32 %s1695_s23, 7 }
 0x11d   : > { %2027 = vmatpush3.bf16.xpose.msra.mxu1 %v889_v1  ;;  %v1862_v47 = vld [vmem:[%s2767_s5 + $0x4] sm:$0xf]  ;;  %v988_v51 = vld [vmem:[%s2767_s5] sm:$0xf]  ;;  %v2218_v63 = vld [vmem:[%s2764_s2 + $0x28] sm:$0xff]   ;;  %s2704_s29 = scalar_lea.hbm %s2769_s7, %s1890_s26  ;;  %s2784_s27 = sand.u32 1, %s2307_s25  }
 0x11e   : > { %2038 = vmatprep.subr.bf16.mxu1 %v2335_v61  ;;  %v1160_v48 = vsel %vm1158_vm7, %v1862_v47, 0  ;;  %v1206_v54 = vsel %vm1158_vm7, %v988_v51, 0  ;;  %v2217_v57 = vld [vmem:[%s2764_s2 + $0x20] sm:$0xff]   ;;  %s1684_s28 = scalar_lea.sflag [#allocation5], %s2784_s27  ;;  %s2237_s10 = scalar_lea.vmem %s2706_s12, 128 }
 0x11f   : > { %2021 = vmatpush3.bf16.msra.mxu0 %v2214_v62  ;;  %p2238_p1 = scmp.ne.s32.totalorder %s2706_s12, %s2237_s10  ;;  %s2337_s13 = smov [#allocation4]  }
 0x120   : > { %2032 = vmatprep.subr.bf16.mxu0 %v2335_v61  ;;  %s2241_s16 = sshll.u32 %s2337_s13, 4  ;;  %s2242_s16 = int_to_ptr.vmem [resolvable:$false] %s2241_s16 }
 0x121   : > { %p2239_p2 = pnand %p2238_p1, %p2429_p3  ;;  %s2243_s17 = scalar_lea.vmem %s2242_s16, 256 }
 0x122   : > { %2023 = vmatmul.mubr.msk.bf16.vlgmr.msra.gmra.mrb[0].mxu0 %vm837_vm5, %v2579_v2  ;;  %p2244_p5 = scmp.lt.s32.totalorder %s2706_s12, %s2242_s16  ;;  %p2245_p6 = scmp.lt.s32.totalorder %s2243_s17, %s2237_s10 }
 0x123   : > { %2034 = vmatprep.mubr.msk.bf16.mxu0 %vm2336_vm3, %v2335_v61  ;;  %2033 = vmatpush3.bf16.msra.mxu0 %v882_v20  ;;  %p2240_p4 = pneg %p2239_p2 }
 0x124   : > { %2046 = vmatprep.subr.bf16.mxu0 %v2335_v61  ;;  %p2246_p7 = por %p2245_p6, %p2244_p5 }
 0x126   : > { %p2247_p9 = pnand %p2246_p7, %p2240_p4 }
 0x1f5   : > { %v875_v3 = vpop.f32.mrb[0].mxu0 }
 0x1f6   : > { %v883_v4 = vpack.c.bf16 %v875_v3, %v875_v3  ;;  %v2024_v5 = vpop.f32.mrb[1].mxu0 }
 0x1f7   : > { %v878_v6 = vpop.f32.mrb[2].mxu0  ;;  %v1306_v5 = vld [vmem:[#allocation2 + $0x10] sm:$0xff] }
 0x1f8   : > { %v2025_v7 = vpop.f32.mrb[3].mxu0  ;;  %2029 = vmatmul.mubr.msk.bf16.vlgmr.msra.gmra.mrb[0].mxu1 %vm884_vm4, %v883_v4  ;;  %v1314_v6 = vsel %vm884_vm4, %v1306_v5, 0 }
 0x1f9   : > { %2042 = vmatprep.mubr.msk.bf16.mxu1 %vm2336_vm3, %v2335_v61  ;;  %2039 = vmatpush3.bf16.msra.mxu1 %v2215_v8 }
 0x1fa   : > { %2040 = vmatprep.subr.bf16.mxu1 %v2335_v61 }
 0x1fd   : > { %2041 = vmatpush3.bf16.msra.mxu1 %v2216_v9 }
 0x1fe   : > { %2052 = vmatprep.subr.bf16.mxu1 %v2335_v61 }
 0x200   : > { %2043 = vmatmul.mubr.msk.bf16.vlgmr.msra.gmra.mrb[4].mxu1 %vm837_vm5, %v2579_v2 }
 0x201   : > { %2054 = vmatprep.mubr.msk.bf16.mxu1 %vm2336_vm3, %v2335_v61  ;;  %2053 = vmatpush3.bf16.msra.mxu1 %v1049_v46 }
 0x202   : > { %2064 = vmatprep.subr.bf16.mxu1 %v2335_v61 }
 0x2cb   : > { %v925_v10 = vpop.f32.mrb[0].mxu1 }
 0x2cc   : > { %v2030_v11 = vpop.f32.mrb[1].mxu1  ;;  %v932_v12 = vsel %vm931_vm6, %v925_v10, -inf }
 0x2cd   : > { %933 = vmax.xlane.f32.xlu0 %v932_v12  ;;  %v928_v13 = vpop.f32.mrb[2].mxu1 }
 0x2ce   : > { %v2031_v14 = vpop.f32.mrb[3].mxu1 }
 0x2d3   : > { %v1040_v21 = vpop.f32.mrb[4].mxu1 }
 0x2d4   : > { %v2044_v22 = vpop.f32.mrb[5].mxu1  ;;  %v1050_v31 = vpack.c.bf16 %v1040_v21, %v1040_v21 }
 0x2d5   : > { %v1043_v23 = vpop.f32.mrb[6].mxu1 }
 0x2d6   : > { %v2045_v24 = vpop.f32.mrb[7].mxu1 }
 0x35a   : > { %v934_v15 = vpop.xlane.xlu0 %933 }
 0x35b   : > { %v935_v16 = vsub.f32 %v925_v10, %v934_v15 }
 0x35d   : > { %v936_v17 = vmul.f32 1.442695, %v935_v16 }
 0x35f   : > { %2221 = vpow2.f32 %v936_v17 }
 0x369   : > { %v2222_v18 = vpop.eup %2221 }
 0x36a   : > { %v938_v19 = vsel %vm931_vm6, %v2222_v18, 0.0 }
 0x36b   : > { %939 = vadd.xlane.f32.xlu0 %v938_v19 }
 0x3f8   : > { %v940_v25 = vpop.xlane.xlu0 %939 }
 0x3f9   : > { %2223 = vrcp.f32 %v940_v25 }
 0x403   : > { %v2224_v26 = vpop.eup %2223 }
 0x404   : > { %v942_v28 = vmul.f32 %v2224_v26, %v2222_v18 }
 0x406   : > { %v943_v29 = vpack.c.bf16 %v942_v28, %v942_v28  ;;  %v1874_v28 = vld [vmem:[%s2767_s5 + $0x8] sm:$0xf] }
 0x408   : > { %2035 = vmatmul.mubr.msk.bf16.vlgmr.msra.gmra.mrb[4].mxu0 %vm931_vm6, %v943_v29  ;;  %v1418_v29 = vsel %vm1158_vm7, %v1874_v28, 0 }
 0x409   : > { %2047 = vmatpush3.bf16.xpose.msra.mxu0 %v1055_v30  ;;  %2048 = vmatprep.mubr.msk.bf16.mxu0 %vm2336_vm3, %v2335_v61 }
 0x40a   : > { %2058 = vmatprep.subr.bf16.mxu0 %v2335_v61 }
 0x410   : > { %2049 = vmatmul.mubr.msk.bf16.vlgmr.msra.gmra.mrb[8].mxu0 %vm884_vm4, %v1050_v31 }
 0x411   : > { %2060 = vmatprep.mubr.msk.bf16.mxu0 %vm2336_vm3, %v2335_v61  ;;  %2059 = vmatpush3.bf16.msra.mxu0 %v1160_v48 }
 0x412   : > { %2070 = vmatprep.subr.bf16.mxu0 %v2335_v61 }
 0x4db   : > { %v981_v32 = vpop.f32.mrb[4].mxu0 }
 0x4dc   : > { %v2036_v33 = vpop.f32.mrb[5].mxu0  ;;  %v987_v55 = vpack.c.bf16 %v981_v32, %v981_v32 }
 0x4dd   : > { %v984_v34 = vpop.f32.mrb[6].mxu0  ;;  %v2219_v33 = vld [vmem:[%s2764_s2 + $0x30] sm:$0xff]  }
 0x4de   : > { %v2037_v35 = vpop.f32.mrb[7].mxu0 }
 0x4df   : > { %v2220_v35 = vld [vmem:[%s2764_s2 + $0x38] sm:$0xff]  }
 0x4e3   : > { %v1091_v36 = vpop.f32.mrb[8].mxu0 }
 0x4e4   : > { %v2050_v37 = vpop.f32.mrb[9].mxu0  ;;  %v1097_v38 = vsel %vm931_vm6, %v1091_v36, -inf }
 0x4e5   : > { %1098 = vmax.xlane.f32.xlu1 %v1097_v38  ;;  %v1094_v39 = vpop.f32.mrb[10].mxu0 }
 0x4e6   : > { %v2051_v40 = vpop.f32.mrb[11].mxu0 }
 0x572   : > { %v1099_v41 = vpop.xlane.xlu1 %1098 }
 0x573   : > { %v1100_v42 = vsub.f32 %v1091_v36, %v1099_v41  ;;  %v1519_v36 = vld [vmem:[#allocation2 + $0x18] sm:$0xff] }
 0x574   : > { %v1527_v40 = vsel %vm884_vm4, %v1519_v36, 0 }
 0x575   : > { %v1101_v43 = vmul.f32 1.442695, %v1100_v42 }
 0x577   : > { %2225 = vpow2.f32 %v1101_v43 }
 0x581   : > { %v2226_v44 = vpop.eup %2225 }
 0x582   : > { %v1103_v45 = vsel %vm931_vm6, %v2226_v44, 0.0 }
 0x583   : > { %1104 = vadd.xlane.f32.xlu1 %v1103_v45 }
 0x610   : > { %v1105_v49 = vpop.xlane.xlu1 %1104 }
 0x611   : > { %2227 = vrcp.f32 %v1105_v49 }
 0x61b   : > { %v2228_v50 = vpop.eup %2227 }
 0x61c   : > { %v1107_v52 = vmul.f32 %v2228_v50, %v2226_v44 }
 0x61e   : > { %v1108_v53 = vpack.c.bf16 %v1107_v52, %v1107_v52 }
 0x620   : > { %2055 = vmatmul.mubr.msk.bf16.vlgmr.msra.gmra.mrb[8].mxu1 %vm931_vm6, %v1108_v53 }
 0x621   : > { %2065 = vmatpush3.bf16.msra.mxu1 %v1206_v54  ;;  %2066 = vmatprep.mubr.msk.bf16.mxu1 %vm2336_vm3, %v2335_v61 }
 0x622   : > { %2078 = vmatprep.subr.bf16.mxu1 %v2335_v61 }
 0x628   : > { %2067 = vmatmul.mubr.msk.bf16.vlgmr.msra.gmra.mrb[12].mxu1 %vm884_vm4, %v987_v55 }
 0x629   : > { %2080 = vmatprep.mubr.msk.bf16.mxu1 %vm2336_vm3, %v2335_v61 }
 0x62a   : > { %2079 = vmatpush3.bf16.xpose.msra.mxu1 %v1314_v6 }
 0x62b   : > { %2090 = vmatprep.subr.bf16.mxu1 %v2335_v61 }
 0x6f3   : > { %v1146_v56 = vpop.f32.mrb[8].mxu1 }
 0x6f4   : > { %v1152_v58 = vpack.c.bf16 %v1146_v56, %v1146_v56  ;;  %v2056_v59 = vpop.f32.mrb[9].mxu1 }
 0x6f5   : > { %v1149_v60 = vpop.f32.mrb[10].mxu1 }
 0x6f6   : > { %v2057_v62 = vpop.f32.mrb[11].mxu1  ;;  %2061 = vmatmul.mubr.msk.bf16.vlgmr.msra.gmra.mrb[12].mxu0 %vm884_vm4, %v1152_v58 }
 0x6f7   : > { %2071 = vmatpush3.bf16.msra.mxu0 %v2217_v57  ;;  %2074 = vmatprep.mubr.msk.bf16.mxu0 %vm2336_vm3, %v2335_v61  ;;  %v1521_v62 = vld [vmem:[#allocation3 + $0x18] sm:$0xff] }
 0x6f8   : > { %2072 = vmatprep.subr.bf16.mxu0 %v2335_v61 }
 0x6fb   : > { %2073 = vmatpush3.bf16.msra.mxu0 %v2218_v63  ;;  %v1242_v0 = vpop.f32.mrb[12].mxu1  ;;  %v1885_v63 = vld [vmem:[%s2767_s5 + $0xc] sm:$0xf] }
 0x6fc   : > { %v2068_v1 = vpop.f32.mrb[13].mxu1  ;;  %2084 = vmatprep.subr.bf16.mxu0 %v2335_v61 }
 0x6fd   : > { %v1245_v3 = vpop.f32.mrb[14].mxu1 }
 0x6fe   : > { %v2069_v4 = vpop.f32.mrb[15].mxu1  ;;  %2075 = vmatmul.mubr.msk.bf16.vlgmr.msra.gmra.mrb[16].mxu0 %vm837_vm5, %v2579_v2 }
 0x6ff   : > { %2086 = vmatprep.mubr.msk.bf16.mxu0 %vm2336_vm3, %v2335_v61  ;;  %2085 = vmatpush3.bf16.msra.mxu0 %v1308_v27 }
 0x700   : > { %2096 = vmatprep.subr.bf16.mxu0 %v2335_v61 }
 0x7c9   : > { %v1196_v7 = vpop.f32.mrb[12].mxu0 }
 0x7ca   : > { %v2649_v8 = vadd.f32 %v1242_v0, %v1196_v7  ;;  %v2062_v9 = vpop.f32.mrb[13].mxu0  ;;  %v1631_v0 = vsel %vm1158_vm7, %v1885_v63, 0 }
 0x7cb   : > { %v1199_v10 = vpop.f32.mrb[14].mxu0 }
 0x7cc   : > { %v2063_v11 = vpop.f32.mrb[15].mxu0 }
 0x7d1   : > { %v1299_v12 = vpop.f32.mrb[16].mxu0 }
 0x7d2   : > { %v1309_v13 = vpack.c.bf16 %v1299_v12, %v1299_v12  ;;  %v2076_v14 = vpop.f32.mrb[17].mxu0  ;;  %v1887_v12 = vld [vmem:[%s2768_s6] ss:$0 sm:$0xff] }
 0x7d3   : > { %v1302_v15 = vpop.f32.mrb[18].mxu0 }
 0x7d4   : > { %v2077_v16 = vpop.f32.mrb[19].mxu0  ;;  %2081 = vmatmul.mubr.msk.bf16.vlgmr.msra.gmra.mrb[16].mxu1 %vm884_vm4, %v1309_v13 }
 0x7d5   : > { %2092 = vmatprep.mubr.msk.bf16.mxu1 %vm2336_vm3, %v2335_v61  ;;  %2091 = vmatpush3.bf16.msra.mxu1 %v1418_v29 }
 0x7d6   : > { %2104 = vmatprep.subr.bf16.mxu1 %v2335_v61 }
 0x8a7   : > { %v1350_v17 = vpop.f32.mrb[16].mxu1 }
 0x8a8   : > { %v2082_v18 = vpop.f32.mrb[17].mxu1  ;;  %v1356_v19 = vsel %vm931_vm6, %v1350_v17, -inf }
 0x8a9   : > { %1357 = vmax.xlane.f32.xlu0 %v1356_v19  ;;  %v1353_v20 = vpop.f32.mrb[18].mxu1 }
 0x8aa   : > { %v2083_v21 = vpop.f32.mrb[19].mxu1 }
 0x936   : > { %v1358_v22 = vpop.xlane.xlu0 %1357 }
 0x937   : > { %v1359_v23 = vsub.f32 %v1350_v17, %v1358_v22 }
 0x939   : > { %v1360_v24 = vmul.f32 1.442695, %v1359_v23 }
 0x93b   : > { %2229 = vpow2.f32 %v1360_v24 }
 0x945   : > { %v2230_v25 = vpop.eup %2229 }
 0x946   : > { %v1362_v26 = vsel %vm931_vm6, %v2230_v25, 0.0 }
 0x947   : > { %1363 = vadd.xlane.f32.xlu1 %v1362_v26 }
 0x9d4   : > { %v1364_v30 = vpop.xlane.xlu1 %1363 }
 0x9d5   : > { %2231 = vrcp.f32 %v1364_v30 }
 0x9df   : > { %v2232_v31 = vpop.eup %2231 }
 0x9e0   : > { %v1366_v32 = vmul.f32 %v2232_v31, %v2230_v25 }
 0x9e2   : > { %v1367_v34 = vpack.c.bf16 %v1366_v32, %v1366_v32 }
 0x9e4   : > { %2087 = vmatmul.mubr.msk.bf16.vlgmr.msra.gmra.mrb[20].mxu0 %vm931_vm6, %v1367_v34 }
 0x9e5   : > { %2097 = vmatpush3.bf16.msra.mxu0 %v2219_v33  ;;  %2100 = vmatprep.mubr.msk.bf16.mxu0 %vm2336_vm3, %v2335_v61 }
 0x9e6   : > { %2098 = vmatprep.subr.bf16.mxu0 %v2335_v61 }
 0x9e9   : > { %2099 = vmatpush3.bf16.msra.mxu0 %v2220_v35 }
 0x9ea   : > { %2110 = vmatprep.subr.bf16.mxu0 %v2335_v61 }
 0x9ec   : > { %2101 = vmatmul.mubr.msk.bf16.vlgmr.msra.gmra.mrb[24].mxu0 %vm837_vm5, %v2579_v2 }
 0x9ed   : > { %2112 = vmatprep.mubr.msk.bf16.mxu0 %vm2336_vm3, %v2335_v61  ;;  %2111 = vmatpush3.bf16.msra.mxu0 %v1521_v62 }
 0xab7   : > { %v1405_v37 = vpop.f32.mrb[20].mxu0 }
 0xab8   : > { %v1411_v38 = vpack.c.bf16 %v1405_v37, %v1405_v37  ;;  %v2088_v39 = vpop.f32.mrb[21].mxu0 }
 0xab9   : > { %v1408_v41 = vpop.f32.mrb[22].mxu0 }
 0xaba   : > { %v2089_v42 = vpop.f32.mrb[23].mxu0  ;;  %2093 = vmatmul.mubr.msk.bf16.vlgmr.msra.gmra.mrb[20].mxu1 %vm884_vm4, %v1411_v38 }
 0xabb   : > { %2105 = vmatpush3.bf16.xpose.msra.mxu1 %v1527_v40  ;;  %2106 = vmatprep.mubr.msk.bf16.mxu1 %vm2336_vm3, %v2335_v61 }
 0xabc   : > { %2116 = vmatprep.subr.bf16.mxu1 %v2335_v61 }
 0xabf   : > { %v1512_v2 = vpop.f32.mrb[24].mxu0 }
 0xac0   : > { %v1522_v43 = vpack.c.bf16 %v1512_v2, %v1512_v2  ;;  %v2102_v44 = vpop.f32.mrb[25].mxu0 }
 0xac1   : > { %v1515_v45 = vpop.f32.mrb[26].mxu0 }
 0xac2   : > { %v2103_v46 = vpop.f32.mrb[27].mxu0  ;;  %2107 = vmatmul.mubr.msk.bf16.vlgmr.msra.gmra.mrb[24].mxu1 %vm884_vm4, %v1522_v43 }
 0xac3   : > { %2118 = vmatprep.mubr.msk.bf16.mxu1 %vm2336_vm3, %v2335_v61  ;;  %2117 = vmatpush3.bf16.msra.mxu1 %v1631_v0 }
 0xb8d   : > { %v1454_v47 = vpop.f32.mrb[20].mxu1 }
 0xb8e   : > { %v1460_v48 = vadd.f32 %v1454_v47, %v2649_v8  ;;  %v2094_v49 = vpop.f32.mrb[21].mxu1 }
 0xb8f   : > { %v1457_v50 = vpop.f32.mrb[22].mxu1 }
 0xb90   : > { %v2095_v51 = vpop.f32.mrb[23].mxu1 }
 0xb95   : > { %v1563_v52 = vpop.f32.mrb[24].mxu1 }
 0xb96   : > { %v2108_v53 = vpop.f32.mrb[25].mxu1  ;;  %v1569_v54 = vsel %vm931_vm6, %v1563_v52, -inf }
 0xb97   : > { %1570 = vmax.xlane.f32.xlu0 %v1569_v54  ;;  %v1566_v55 = vpop.f32.mrb[26].mxu1 }
 0xb98   : > { %v2109_v56 = vpop.f32.mrb[27].mxu1 }
 0xc24   : > { %v1571_v57 = vpop.xlane.xlu0 %1570 }
 0xc25   : > { %v1572_v58 = vsub.f32 %v1563_v52, %v1571_v57 }
 0xc27   : > { %v1573_v59 = vmul.f32 1.442695, %v1572_v58 }
 0xc29   : > { %2233 = vpow2.f32 %v1573_v59 }
 0xc33   : > { %v2234_v60 = vpop.eup %2233 }
 0xc34   : > { %v1575_v61 = vsel %vm931_vm6, %v2234_v60, 0.0 }
 0xc35   : > { %1576 = vadd.xlane.f32.xlu1 %v1575_v61 }
 0xcc2   : > { %v1577_v1 = vpop.xlane.xlu1 %1576 }
 0xcc3   : > { %2235 = vrcp.f32 %v1577_v1 }
 0xccd   : > { %v2236_v3 = vpop.eup %2235 }
 0xcce   : > { %v1579_v4 = vmul.f32 %v2236_v3, %v2234_v60 }
 0xcd0   : > { %v1580_v5 = vpack.c.bf16 %v1579_v4, %v1579_v4 }
 0xcd2   : > { %2113 = vmatmul.mubr.msk.bf16.vlgmr.msra.gmra.mrb[28].mxu0 %vm931_vm6, %v1580_v5 }
 0xda5   : > { %v1618_v6 = vpop.f32.mrb[28].mxu0 }
 0xda6   : > { %v1624_v7 = vpack.c.bf16 %v1618_v6, %v1618_v6  ;;  %v2114_v8 = vpop.f32.mrb[29].mxu0 }
 0xda7   : > { %v1621_v9 = vpop.f32.mrb[30].mxu0 }
 0xda8   : > { %v2115_v10 = vpop.f32.mrb[31].mxu0  ;;  %2119 = vmatmul.mubr.msk.bf16.vlgmr.msra.gmra.mrb[28].mxu1 %vm884_vm4, %v1624_v7 }
 0xe7b   : > { %v1667_v11 = vpop.f32.mrb[28].mxu1 }
 0xe7c   : > { %v1673_v13 = vadd.f32 %v1667_v11, %v1460_v48  ;;  %v2120_v14 = vpop.f32.mrb[29].mxu1 }
 0xe7d   : > { %v1670_v15 = vpop.f32.mrb[30].mxu1 }
 0xe7e   : > { %v1681_v16 = vadd.f32 %v1887_v12, %v1673_v13  ;;  %v2121_v17 = vpop.f32.mrb[31].mxu1 }
 0xe80   : > { %1682 = vst.msk [vmem:[%s308_s19] sm:$0xff] %vm837_vm5, %v1681_v16 }
 0xe81   : > { %2250 = shalt.err (!%p2247_p9)
}
 0xe82   : > { %s2251_s19 = scalar_lea.hbm %s2704_s29, 128  ;;  %s2255_s22 = scalar_lea.hbm %s2769_s7, 512 }
 0xe83   : > { %p2252_p10 = scmp.ne.s32.totalorder %s2704_s29, %s2251_s19  ;;  %p2256_p13 = scmp.lt.u32.totalorder %s2704_s29, %s2769_s7 }
 0xe84   : > { %p2257_p0 = scmp.lt.u32.totalorder %s2255_s22, %s2251_s19  ;;  %p2259_p2 = scmp.lt.u32.totalorder %s2251_s19, %s2704_s29 }
 0xe85   : > { %p2253_p11 = pnand %p2252_p10, %p2429_p3 }
 0xe86   : > { %p2258_p1 = por %p2257_p0, %p2256_p13 }
 0xe87   : > { %p2254_p12 = pneg %p2253_p11 }
 0xe88   : > { %p2260_p4 = por %p2259_p2, %p2258_p1 }
 0xe8a   : > { %p2261_p5 = pnand %p2260_p4, %p2254_p12 }
 0xe8c   : > { %2264 = shalt.err (!%p2261_p5)
}
 0xe8d   : > { %2122 = dma.vmem_to_hbm [thread:$0]  (%p2429_p3), %s2706_s12, 128, %s2704_s29, %s1684_s28  }
 0xe8e PF: > { %p2128_p6 = scmp.ge.s32.totalorder %s2331_s8, 2  ;;  %s1711_s11 = sand.u32 1, %s2303_s24  }
 0xe8f   : > { %s1712_s26 = scalar_lea.sflag [#allocation5], %s1711_s11 }
 0xe90   : > { %p2125_p7 = pnand %p2128_p6, %p2438_p8 }
 0xe92   : > { %2298 = dma.done.wait (!%p2125_p7), %s1712_s26, 128  }
 0xe93   : > { %2300 = vsyncadd (!%p2125_p7), %s1712_s26, 4294967168  ;;  %s20_s8 = sadd.s32 1, %s2331_s8   ;;  %s2785_s20 = sld [smem:[#allocation7_spill]] }
 0xe94   : > { %p17_p9 = scmp.ge.s32.totalorder %s20_s8, 6   ;;  %s2786_s26 = sld [smem:[#allocation12_spill]] }
 0xe95   : > { %s2787_s27 = sld [smem:[#allocation8_spill]]  ;;  %s2788_s28 = sld [smem:[#allocation9_spill]] }
 0xe96   : > { %s2789_s29 = sld [smem:[#allocation10_spill]]  ;;  %s2790_s30 = sld [smem:[#allocation11_spill]] }
 0xe97   : > { %s2791_s24 = smov %s2307_s25  ;;  %19 = sbr.rel (!%p17_p9) target bundleno = 5 (0x5), region = 114 }
 0xe99   : > { %s2792_s25 = smov %s2785_s20 }
 0xe9e   :  { %1717 = vsyncpa [#allocation5], 1 }
 0xe9f   :  { %1719 = vsyncpa [#allocation5 + $0x1], 1 }

</bundles_post_ra>
